<compile_context>
chip_gen: v7x
topology: tpu7x:2x2x1
jax: 0.10.0
libtpu: 0.0.40
codegen_flags: <defaults>
</compile_context>

<pallas_src>
import functools

import jax
import jax.numpy as jnp
from jax import lax
from jax.experimental import pallas as pl
from jax.experimental.pallas import tpu as pltpu


def _glstm_kernel(T, B, F, x_ref, wih_ref, whh_ref, b_ref, out_ref):
    """Fused grouped-LSTM over the whole sequence (single grid step).

    x_ref   : (T*B, F)  time-major rows (row = t*B + b), group-contiguous feats
    wih_ref : (F, 4F)   block-diagonal input weights, gate-major columns
    whh_ref : (F, 4F)   block-diagonal recurrent weights, same column layout
    b_ref   : (1, 4F)   fused bias (b_ih + b_hh), same column layout
    out_ref : (T*B, F)  hidden states, same row/column layout as x_ref
    """
    # Whole-sequence input projection: one big MXU matmul, hoisted off the
    # serial recurrence path. Bias folded in once.
    xw = (jnp.dot(x_ref[...], wih_ref[...], preferred_element_type=jnp.float32)
          + b_ref[...])                                    # (T*B, 4F)

    w_hh = whh_ref[...]                                    # hoist weight load
    h = jnp.zeros((B, F), jnp.float32)
    c = jnp.zeros((B, F), jnp.float32)

    # Short static recurrence: fully unrolled, so every slice is static and the
    # scheduler sees the entire dependency chain.
    for t in range(T):
        gates = xw[t * B:(t + 1) * B, :] + jnp.dot(
            h, w_hh, preferred_element_type=jnp.float32)   # (B, 4F)
        # Gate slices are 128-lane aligned (F = K*G is a multiple of 128 here).
        i_g = jax.nn.sigmoid(gates[:, 0 * F:1 * F])
        f_g = jax.nn.sigmoid(gates[:, 1 * F:2 * F])
        g_g = jnp.tanh(gates[:, 2 * F:3 * F])
        o_g = jax.nn.sigmoid(gates[:, 3 * F:4 * F])
        c = f_g * c + i_g * g_g
        h = o_g * jnp.tanh(c)
        out_ref[t * B:(t + 1) * B, :] = h                  # lane-dense store


def _fuse_block_diag(w, K, G):
    """(K, 4G, G) torch-layout weights -> (F, 4F) block-diagonal weight.

    Rows   : input features, group-contiguous (k*G + g_in).
    Columns: gate-major then group-contiguous (gate*F + k*G + g_out).
    """
    F = K * G
    w_t = jnp.transpose(w, (0, 2, 1)).reshape(K, G, 4, G)   # (grp, in, gate, out)
    eye = jnp.eye(K, dtype=w.dtype)
    bd = jnp.einsum('kigo,kj->kigjo', w_t, eye)             # (grp, in, gate, grp', out)
    return bd.reshape(F, 4 * F)


def glstm_pallas(x, w_ih, w_hh, b_ih, b_hh, K):
    """x: (B, T, F) f32; w_ih/w_hh: (K, 4G, G); b_ih/b_hh: (K, 4G)."""
    B, T, F = x.shape
    G = F // K

    # --- wrapper-side layout plumbing (free) --------------------------------
    wih_bd = _fuse_block_diag(w_ih, K, G)                    # (F, 4F)
    whh_bd = _fuse_block_diag(w_hh, K, G)                    # (F, 4F)
    bias = (b_ih + b_hh).reshape(K, 4, G).transpose(1, 0, 2).reshape(1, 4 * F)
    x_tb = x.transpose(1, 0, 2).reshape(T * B, F)            # row = t*B + b

    h_tb = pl.pallas_call(
        functools.partial(_glstm_kernel, T, B, F),
        out_shape=jax.ShapeDtypeStruct((T * B, F), jnp.float32),
        grid_spec=pltpu.PrefetchScalarGridSpec(
            num_scalar_prefetch=0,
            grid=(1,),
            in_specs=[
                pl.BlockSpec((T * B, F), lambda i: (0, 0)),
                pl.BlockSpec((F, 4 * F), lambda i: (0, 0)),
                pl.BlockSpec((F, 4 * F), lambda i: (0, 0)),
                pl.BlockSpec((1, 4 * F), lambda i: (0, 0)),
            ],
            out_specs=pl.BlockSpec((T * B, F), lambda i: (0, 0)),
        ),
        compiler_params=pltpu.CompilerParams(
            dimension_semantics=("arbitrary",)),
    )(x_tb, wih_bd, whh_bd, bias)

    # (T*B, F[k*G+g]) -> torch h.permute(0,1,3,2).view(B, T, F): index g*K + k.
    return h_tb.reshape(T, B, K, G).transpose(1, 0, 3, 2).reshape(B, T, F)


def glstm_reference(x, w_ih, w_hh, b_ih, b_hh, K):
    """Pure-JAX reference matching the PyTorch GLSTM forward."""
    B, T, F = x.shape
    G = F // K
    x_g = x.reshape(B, T, K, G).transpose(2, 1, 0, 3)        # (K, T, B, G)
    wih_t = jnp.transpose(w_ih, (0, 2, 1))
    whh_t = jnp.transpose(w_hh, (0, 2, 1))
    bias = b_ih + b_hh

    def one_group(xg, wih, whh, b):
        def step(carry, x_t):
            h, c = carry
            gates = x_t @ wih + h @ whh + b
            i = jax.nn.sigmoid(gates[:, :G])
            f = jax.nn.sigmoid(gates[:, G:2 * G])
            g = jnp.tanh(gates[:, 2 * G:3 * G])
            o = jax.nn.sigmoid(gates[:, 3 * G:])
            c = f * c + i * g
            h = o * jnp.tanh(c)
            return (h, c), h

        init = (jnp.zeros((B, G), jnp.float32), jnp.zeros((B, G), jnp.float32))
        _, hs = lax.scan(step, init, xg)
        return hs                                            # (T, B, G)

    h_g = jax.vmap(one_group)(x_g, wih_t, whh_t, bias)       # (K, T, B, G)
    return h_g.transpose(2, 1, 3, 0).reshape(B, T, F)


if __name__ == "__main__":
    def run_case(key, B, T, K, G):
        F = K * G
        k_x, k_wih, k_whh, k_bih, k_bhh = jax.random.split(key, 5)
        x = jax.random.normal(k_x, (B, T, F), dtype=jnp.float32)
        scale = 1.0 / jnp.sqrt(G)   # mimic PyTorch LSTM uniform(-1/sqrt(H), 1/sqrt(H))
        w_ih = jax.random.uniform(k_wih, (K, 4 * G, G), jnp.float32, -scale, scale)
        w_hh = jax.random.uniform(k_whh, (K, 4 * G, G), jnp.float32, -scale, scale)
        b_ih = jax.random.uniform(k_bih, (K, 4 * G), jnp.float32, -scale, scale)
        b_hh = jax.random.uniform(k_bhh, (K, 4 * G), jnp.float32, -scale, scale)

        out = jax.block_until_ready(glstm_pallas(x, w_ih, w_hh, b_ih, b_hh, K))
        ref = jax.block_until_ready(glstm_reference(x, w_ih, w_hh, b_ih, b_hh, K))
        assert out.shape == (B, T, F), out.shape
        err = float(jnp.max(jnp.abs(out - ref)))
        assert jnp.allclose(out, ref, rtol=1e-2, atol=1e-2), err

    key = jax.random.PRNGKey(0)
    k1, k2 = jax.random.split(key)
    # Grouped case (4 groups of 32 features), small shapes.
    run_case(k1, B=2, T=8, K=4, G=32)
    # Module configuration (g_num=1, single full-width LSTM), scaled-down feat dim.
    run_case(k2, B=2, T=8, K=1, G=128)
    print("KERNEL_OK")
</pallas_src>

<mosaic_0001>
module attributes {stable_mosaic.version = 11 : i64} {
  func.func @_glstm_kernel(%arg0: i32, %arg1: memref<16x128xf32, #tpu.memory_space<vmem>>, %arg2: memref<128x512xf32, #tpu.memory_space<vmem>>, %arg3: memref<128x512xf32, #tpu.memory_space<vmem>>, %arg4: memref<1x512xf32, #tpu.memory_space<vmem>>, %arg5: memref<16x128xf32, #tpu.memory_space<vmem>>) attributes {dimension_semantics = [#tpu.dimension_semantics<arbitrary>], iteration_bounds = array<i64: 1>, scalar_prefetch = 0 : i64, scratch_operands = 0 : i64, tpu.core_type = #tpu.core_type<tc>, window_params = [{pipeline_mode = #tpu.pipeline_mode<synchronous>, transform_indices = @transform_0, window_bounds = array<i64: 16, 128>}, {pipeline_mode = #tpu.pipeline_mode<synchronous>, transform_indices = @transform_1, window_bounds = array<i64: 128, 512>}, {pipeline_mode = #tpu.pipeline_mode<synchronous>, transform_indices = @transform_2, window_bounds = array<i64: 128, 512>}, {pipeline_mode = #tpu.pipeline_mode<synchronous>, transform_indices = @transform_3, window_bounds = array<i64: 1, 512>}, {pipeline_mode = #tpu.pipeline_mode<synchronous>, transform_indices = @transform_4, window_bounds = array<i64: 16, 128>}]} {
    %c0 = arith.constant 0 : index
    %c0_0 = arith.constant 0 : index
    %0 = vector.load %arg1[%c0, %c0_0] : memref<16x128xf32, #tpu.memory_space<vmem>>, vector<16x128xf32>
    %c0_1 = arith.constant 0 : index
    %c0_2 = arith.constant 0 : index
    %1 = vector.load %arg2[%c0_1, %c0_2] : memref<128x512xf32, #tpu.memory_space<vmem>>, vector<128x512xf32>
    %cst = arith.constant dense<0.000000e+00> : vector<16x512xf32>
    %2 = tpu.matmul %0, %1, %cst {dimension_numbers = #tpu.dot_dimension_numbers<[1], [0], [0], [1], [0, 0, 1, 1], [], []>} : vector<16x128xf32>, vector<128x512xf32>, vector<16x512xf32> -> vector<16x512xf32>
    %c0_3 = arith.constant 0 : index
    %c0_4 = arith.constant 0 : index
    %3 = vector.load %arg4[%c0_3, %c0_4] : memref<1x512xf32, #tpu.memory_space<vmem>>, vector<1x512xf32>
    %4 = vector.broadcast %3 : vector<1x512xf32> to vector<16x512xf32>
    %5 = arith.addf %2, %4 : vector<16x512xf32>
    %c0_5 = arith.constant 0 : index
    %c0_6 = arith.constant 0 : index
    %6 = vector.load %arg3[%c0_5, %c0_6] : memref<128x512xf32, #tpu.memory_space<vmem>>, vector<128x512xf32>
    %cst_7 = arith.constant 0.000000e+00 : f32
    %7 = vector.broadcast %cst_7 : f32 to vector<2x128xf32>
    %cst_8 = arith.constant 0.000000e+00 : f32
    %8 = vector.broadcast %cst_8 : f32 to vector<2x128xf32>
    %9 = vector.extract_strided_slice %5 {offsets = [0, 0], sizes = [2, 512], strides = [1, 1]} : vector<16x512xf32> to vector<2x512xf32>
    %cst_9 = arith.constant dense<0.000000e+00> : vector<2x512xf32>
    %10 = tpu.matmul %7, %6, %cst_9 {dimension_numbers = #tpu.dot_dimension_numbers<[1], [0], [0], [1], [0, 0, 1, 1], [], []>} : vector<2x128xf32>, vector<128x512xf32>, vector<2x512xf32> -> vector<2x512xf32>
    %11 = arith.addf %9, %10 : vector<2x512xf32>
    %12 = vector.extract_strided_slice %11 {offsets = [0, 0], sizes = [2, 128], strides = [1, 1]} : vector<2x512xf32> to vector<2x128xf32>
    %13 = arith.negf %12 : vector<2x128xf32>
    %14 = math.exp %13 : vector<2x128xf32>
    %cst_10 = arith.constant 1.000000e+00 : f32
    %15 = vector.broadcast %cst_10 : f32 to vector<2x128xf32>
    %16 = arith.addf %15, %14 : vector<2x128xf32>
    %17 = arith.divf %15, %16 : vector<2x128xf32>
    %18 = vector.extract_strided_slice %11 {offsets = [0, 128], sizes = [2, 128], strides = [1, 1]} : vector<2x512xf32> to vector<2x128xf32>
    %19 = arith.negf %18 : vector<2x128xf32>
    %20 = math.exp %19 : vector<2x128xf32>
    %cst_11 = arith.constant 1.000000e+00 : f32
    %21 = vector.broadcast %cst_11 : f32 to vector<2x128xf32>
    %22 = arith.addf %21, %20 : vector<2x128xf32>
    %23 = arith.divf %21, %22 : vector<2x128xf32>
    %24 = vector.extract_strided_slice %11 {offsets = [0, 256], sizes = [2, 128], strides = [1, 1]} : vector<2x512xf32> to vector<2x128xf32>
    %25 = math.tanh %24 : vector<2x128xf32>
    %26 = vector.extract_strided_slice %11 {offsets = [0, 384], sizes = [2, 128], strides = [1, 1]} : vector<2x512xf32> to vector<2x128xf32>
    %27 = arith.negf %26 : vector<2x128xf32>
    %28 = math.exp %27 : vector<2x128xf32>
    %cst_12 = arith.constant 1.000000e+00 : f32
    %29 = vector.broadcast %cst_12 : f32 to vector<2x128xf32>
    %30 = arith.addf %29, %28 : vector<2x128xf32>
    %31 = arith.divf %29, %30 : vector<2x128xf32>
    %32 = arith.mulf %23, %8 : vector<2x128xf32>
    %33 = arith.mulf %17, %25 : vector<2x128xf32>
    %34 = arith.addf %32, %33 : vector<2x128xf32>
    %35 = math.tanh %34 : vector<2x128xf32>
    %36 = arith.mulf %31, %35 : vector<2x128xf32>
    %c0_13 = arith.constant 0 : index
    %c0_14 = arith.constant 0 : index
    %37 = vector.load %arg5[%c0_13, %c0_14] : memref<16x128xf32, #tpu.memory_space<vmem>>, vector<2x128xf32>
    tpu.vector_store %arg5[%c0_13, %c0_14], %36 {strides = array<i32>} : memref<16x128xf32, #tpu.memory_space<vmem>>, vector<2x128xf32>,
    %38 = vector.extract_strided_slice %5 {offsets = [2, 0], sizes = [2, 512], strides = [1, 1]} : vector<16x512xf32> to vector<2x512xf32>
    %cst_15 = arith.constant dense<0.000000e+00> : vector<2x512xf32>
    %39 = tpu.matmul %36, %6, %cst_15 {dimension_numbers = #tpu.dot_dimension_numbers<[1], [0], [0], [1], [0, 0, 1, 1], [], []>} : vector<2x128xf32>, vector<128x512xf32>, vector<2x512xf32> -> vector<2x512xf32>
    %40 = arith.addf %38, %39 : vector<2x512xf32>
    %41 = vector.extract_strided_slice %40 {offsets = [0, 0], sizes = [2, 128], strides = [1, 1]} : vector<2x512xf32> to vector<2x128xf32>
    %42 = arith.negf %41 : vector<2x128xf32>
    %43 = math.exp %42 : vector<2x128xf32>
    %cst_16 = arith.constant 1.000000e+00 : f32
    %44 = vector.broadcast %cst_16 : f32 to vector<2x128xf32>
    %45 = arith.addf %44, %43 : vector<2x128xf32>
    %46 = arith.divf %44, %45 : vector<2x128xf32>
    %47 = vector.extract_strided_slice %40 {offsets = [0, 128], sizes = [2, 128], strides = [1, 1]} : vector<2x512xf32> to vector<2x128xf32>
    %48 = arith.negf %47 : vector<2x128xf32>
    %49 = math.exp %48 : vector<2x128xf32>
    %cst_17 = arith.constant 1.000000e+00 : f32
    %50 = vector.broadcast %cst_17 : f32 to vector<2x128xf32>
    %51 = arith.addf %50, %49 : vector<2x128xf32>
    %52 = arith.divf %50, %51 : vector<2x128xf32>
    %53 = vector.extract_strided_slice %40 {offsets = [0, 256], sizes = [2, 128], strides = [1, 1]} : vector<2x512xf32> to vector<2x128xf32>
    %54 = math.tanh %53 : vector<2x128xf32>
    %55 = vector.extract_strided_slice %40 {offsets = [0, 384], sizes = [2, 128], strides = [1, 1]} : vector<2x512xf32> to vector<2x128xf32>
    %56 = arith.negf %55 : vector<2x128xf32>
    %57 = math.exp %56 : vector<2x128xf32>
    %cst_18 = arith.constant 1.000000e+00 : f32
    %58 = vector.broadcast %cst_18 : f32 to vector<2x128xf32>
    %59 = arith.addf %58, %57 : vector<2x128xf32>
    %60 = arith.divf %58, %59 : vector<2x128xf32>
    %61 = arith.mulf %52, %34 : vector<2x128xf32>
    %62 = arith.mulf %46, %54 : vector<2x128xf32>
    %63 = arith.addf %61, %62 : vector<2x128xf32>
    %64 = math.tanh %63 : vector<2x128xf32>
    %65 = arith.mulf %60, %64 : vector<2x128xf32>
    %c2 = arith.constant 2 : index
    %c0_19 = arith.constant 0 : index
    %66 = vector.load %arg5[%c2, %c0_19] : memref<16x128xf32, #tpu.memory_space<vmem>>, vector<2x128xf32>
    tpu.vector_store %arg5[%c2, %c0_19], %65 {strides = array<i32>} : memref<16x128xf32, #tpu.memory_space<vmem>>, vector<2x128xf32>,
    %67 = vector.extract_strided_slice %5 {offsets = [4, 0], sizes = [2, 512], strides = [1, 1]} : vector<16x512xf32> to vector<2x512xf32>
    %cst_20 = arith.constant dense<0.000000e+00> : vector<2x512xf32>
    %68 = tpu.matmul %65, %6, %cst_20 {dimension_numbers = #tpu.dot_dimension_numbers<[1], [0], [0], [1], [0, 0, 1, 1], [], []>} : vector<2x128xf32>, vector<128x512xf32>, vector<2x512xf32> -> vector<2x512xf32>
    %69 = arith.addf %67, %68 : vector<2x512xf32>
    %70 = vector.extract_strided_slice %69 {offsets = [0, 0], sizes = [2, 128], strides = [1, 1]} : vector<2x512xf32> to vector<2x128xf32>
    %71 = arith.negf %70 : vector<2x128xf32>
    %72 = math.exp %71 : vector<2x128xf32>
    %cst_21 = arith.constant 1.000000e+00 : f32
    %73 = vector.broadcast %cst_21 : f32 to vector<2x128xf32>
    %74 = arith.addf %73, %72 : vector<2x128xf32>
    %75 = arith.divf %73, %74 : vector<2x128xf32>
    %76 = vector.extract_strided_slice %69 {offsets = [0, 128], sizes = [2, 128], strides = [1, 1]} : vector<2x512xf32> to vector<2x128xf32>
    %77 = arith.negf %76 : vector<2x128xf32>
    %78 = math.exp %77 : vector<2x128xf32>
    %cst_22 = arith.constant 1.000000e+00 : f32
    %79 = vector.broadcast %cst_22 : f32 to vector<2x128xf32>
    %80 = arith.addf %79, %78 : vector<2x128xf32>
    %81 = arith.divf %79, %80 : vector<2x128xf32>
    %82 = vector.extract_strided_slice %69 {offsets = [0, 256], sizes = [2, 128], strides = [1, 1]} : vector<2x512xf32> to vector<2x128xf32>
    %83 = math.tanh %82 : vector<2x128xf32>
    %84 = vector.extract_strided_slice %69 {offsets = [0, 384], sizes = [2, 128], strides = [1, 1]} : vector<2x512xf32> to vector<2x128xf32>
    %85 = arith.negf %84 : vector<2x128xf32>
    %86 = math.exp %85 : vector<2x128xf32>
    %cst_23 = arith.constant 1.000000e+00 : f32
    %87 = vector.broadcast %cst_23 : f32 to vector<2x128xf32>
    %88 = arith.addf %87, %86 : vector<2x128xf32>
    %89 = arith.divf %87, %88 : vector<2x128xf32>
    %90 = arith.mulf %81, %63 : vector<2x128xf32>
    %91 = arith.mulf %75, %83 : vector<2x128xf32>
    %92 = arith.addf %90, %91 : vector<2x128xf32>
    %93 = math.tanh %92 : vector<2x128xf32>
    %94 = arith.mulf %89, %93 : vector<2x128xf32>
    %c4 = arith.constant 4 : index
    %c0_24 = arith.constant 0 : index
    %95 = vector.load %arg5[%c4, %c0_24] : memref<16x128xf32, #tpu.memory_space<vmem>>, vector<2x128xf32>
    tpu.vector_store %arg5[%c4, %c0_24], %94 {strides = array<i32>} : memref<16x128xf32, #tpu.memory_space<vmem>>, vector<2x128xf32>,
    %96 = vector.extract_strided_slice %5 {offsets = [6, 0], sizes = [2, 512], strides = [1, 1]} : vector<16x512xf32> to vector<2x512xf32>
    %cst_25 = arith.constant dense<0.000000e+00> : vector<2x512xf32>
    %97 = tpu.matmul %94, %6, %cst_25 {dimension_numbers = #tpu.dot_dimension_numbers<[1], [0], [0], [1], [0, 0, 1, 1], [], []>} : vector<2x128xf32>, vector<128x512xf32>, vector<2x512xf32> -> vector<2x512xf32>
    %98 = arith.addf %96, %97 : vector<2x512xf32>
    %99 = vector.extract_strided_slice %98 {offsets = [0, 0], sizes = [2, 128], strides = [1, 1]} : vector<2x512xf32> to vector<2x128xf32>
    %100 = arith.negf %99 : vector<2x128xf32>
    %101 = math.exp %100 : vector<2x128xf32>
    %cst_26 = arith.constant 1.000000e+00 : f32
    %102 = vector.broadcast %cst_26 : f32 to vector<2x128xf32>
    %103 = arith.addf %102, %101 : vector<2x128xf32>
    %104 = arith.divf %102, %103 : vector<2x128xf32>
    %105 = vector.extract_strided_slice %98 {offsets = [0, 128], sizes = [2, 128], strides = [1, 1]} : vector<2x512xf32> to vector<2x128xf32>
    %106 = arith.negf %105 : vector<2x128xf32>
    %107 = math.exp %106 : vector<2x128xf32>
    %cst_27 = arith.constant 1.000000e+00 : f32
    %108 = vector.broadcast %cst_27 : f32 to vector<2x128xf32>
    %109 = arith.addf %108, %107 : vector<2x128xf32>
    %110 = arith.divf %108, %109 : vector<2x128xf32>
    %111 = vector.extract_strided_slice %98 {offsets = [0, 256], sizes = [2, 128], strides = [1, 1]} : vector<2x512xf32> to vector<2x128xf32>
    %112 = math.tanh %111 : vector<2x128xf32>
    %113 = vector.extract_strided_slice %98 {offsets = [0, 384], sizes = [2, 128], strides = [1, 1]} : vector<2x512xf32> to vector<2x128xf32>
    %114 = arith.negf %113 : vector<2x128xf32>
    %115 = math.exp %114 : vector<2x128xf32>
    %cst_28 = arith.constant 1.000000e+00 : f32
    %116 = vector.broadcast %cst_28 : f32 to vector<2x128xf32>
    %117 = arith.addf %116, %115 : vector<2x128xf32>
    %118 = arith.divf %116, %117 : vector<2x128xf32>
    %119 = arith.mulf %110, %92 : vector<2x128xf32>
    %120 = arith.mulf %104, %112 : vector<2x128xf32>
    %121 = arith.addf %119, %120 : vector<2x128xf32>
    %122 = math.tanh %121 : vector<2x128xf32>
    %123 = arith.mulf %118, %122 : vector<2x128xf32>
    %c6 = arith.constant 6 : index
    %c0_29 = arith.constant 0 : index
    %124 = vector.load %arg5[%c6, %c0_29] : memref<16x128xf32, #tpu.memory_space<vmem>>, vector<2x128xf32>
    tpu.vector_store %arg5[%c6, %c0_29], %123 {strides = array<i32>} : memref<16x128xf32, #tpu.memory_space<vmem>>, vector<2x128xf32>,
    %125 = vector.extract_strided_slice %5 {offsets = [8, 0], sizes = [2, 512], strides = [1, 1]} : vector<16x512xf32> to vector<2x512xf32>
    %cst_30 = arith.constant dense<0.000000e+00> : vector<2x512xf32>
    %126 = tpu.matmul %123, %6, %cst_30 {dimension_numbers = #tpu.dot_dimension_numbers<[1], [0], [0], [1], [0, 0, 1, 1], [], []>} : vector<2x128xf32>, vector<128x512xf32>, vector<2x512xf32> -> vector<2x512xf32>
    %127 = arith.addf %125, %126 : vector<2x512xf32>
    %128 = vector.extract_strided_slice %127 {offsets = [0, 0], sizes = [2, 128], strides = [1, 1]} : vector<2x512xf32> to vector<2x128xf32>
    %129 = arith.negf %128 : vector<2x128xf32>
    %130 = math.exp %129 : vector<2x128xf32>
    %cst_31 = arith.constant 1.000000e+00 : f32
    %131 = vector.broadcast %cst_31 : f32 to vector<2x128xf32>
    %132 = arith.addf %131, %130 : vector<2x128xf32>
    %133 = arith.divf %131, %132 : vector<2x128xf32>
    %134 = vector.extract_strided_slice %127 {offsets = [0, 128], sizes = [2, 128], strides = [1, 1]} : vector<2x512xf32> to vector<2x128xf32>
    %135 = arith.negf %134 : vector<2x128xf32>
    %136 = math.exp %135 : vector<2x128xf32>
    %cst_32 = arith.constant 1.000000e+00 : f32
    %137 = vector.broadcast %cst_32 : f32 to vector<2x128xf32>
    %138 = arith.addf %137, %136 : vector<2x128xf32>
    %139 = arith.divf %137, %138 : vector<2x128xf32>
    %140 = vector.extract_strided_slice %127 {offsets = [0, 256], sizes = [2, 128], strides = [1, 1]} : vector<2x512xf32> to vector<2x128xf32>
    %141 = math.tanh %140 : vector<2x128xf32>
    %142 = vector.extract_strided_slice %127 {offsets = [0, 384], sizes = [2, 128], strides = [1, 1]} : vector<2x512xf32> to vector<2x128xf32>
    %143 = arith.negf %142 : vector<2x128xf32>
    %144 = math.exp %143 : vector<2x128xf32>
    %cst_33 = arith.constant 1.000000e+00 : f32
    %145 = vector.broadcast %cst_33 : f32 to vector<2x128xf32>
    %146 = arith.addf %145, %144 : vector<2x128xf32>
    %147 = arith.divf %145, %146 : vector<2x128xf32>
    %148 = arith.mulf %139, %121 : vector<2x128xf32>
    %149 = arith.mulf %133, %141 : vector<2x128xf32>
    %150 = arith.addf %148, %149 : vector<2x128xf32>
    %151 = math.tanh %150 : vector<2x128xf32>
    %152 = arith.mulf %147, %151 : vector<2x128xf32>
    %c8 = arith.constant 8 : index
    %c0_34 = arith.constant 0 : index
    %153 = vector.load %arg5[%c8, %c0_34] : memref<16x128xf32, #tpu.memory_space<vmem>>, vector<2x128xf32>
    tpu.vector_store %arg5[%c8, %c0_34], %152 {strides = array<i32>} : memref<16x128xf32, #tpu.memory_space<vmem>>, vector<2x128xf32>,
    %154 = vector.extract_strided_slice %5 {offsets = [10, 0], sizes = [2, 512], strides = [1, 1]} : vector<16x512xf32> to vector<2x512xf32>
    %cst_35 = arith.constant dense<0.000000e+00> : vector<2x512xf32>
    %155 = tpu.matmul %152, %6, %cst_35 {dimension_numbers = #tpu.dot_dimension_numbers<[1], [0], [0], [1], [0, 0, 1, 1], [], []>} : vector<2x128xf32>, vector<128x512xf32>, vector<2x512xf32> -> vector<2x512xf32>
    %156 = arith.addf %154, %155 : vector<2x512xf32>
    %157 = vector.extract_strided_slice %156 {offsets = [0, 0], sizes = [2, 128], strides = [1, 1]} : vector<2x512xf32> to vector<2x128xf32>
    %158 = arith.negf %157 : vector<2x128xf32>
    %159 = math.exp %158 : vector<2x128xf32>
    %cst_36 = arith.constant 1.000000e+00 : f32
    %160 = vector.broadcast %cst_36 : f32 to vector<2x128xf32>
    %161 = arith.addf %160, %159 : vector<2x128xf32>
    %162 = arith.divf %160, %161 : vector<2x128xf32>
    %163 = vector.extract_strided_slice %156 {offsets = [0, 128], sizes = [2, 128], strides = [1, 1]} : vector<2x512xf32> to vector<2x128xf32>
    %164 = arith.negf %163 : vector<2x128xf32>
    %165 = math.exp %164 : vector<2x128xf32>
    %cst_37 = arith.constant 1.000000e+00 : f32
    %166 = vector.broadcast %cst_37 : f32 to vector<2x128xf32>
    %167 = arith.addf %166, %165 : vector<2x128xf32>
    %168 = arith.divf %166, %167 : vector<2x128xf32>
    %169 = vector.extract_strided_slice %156 {offsets = [0, 256], sizes = [2, 128], strides = [1, 1]} : vector<2x512xf32> to vector<2x128xf32>
    %170 = math.tanh %169 : vector<2x128xf32>
    %171 = vector.extract_strided_slice %156 {offsets = [0, 384], sizes = [2, 128], strides = [1, 1]} : vector<2x512xf32> to vector<2x128xf32>
    %172 = arith.negf %171 : vector<2x128xf32>
    %173 = math.exp %172 : vector<2x128xf32>
    %cst_38 = arith.constant 1.000000e+00 : f32
    %174 = vector.broadcast %cst_38 : f32 to vector<2x128xf32>
    %175 = arith.addf %174, %173 : vector<2x128xf32>
    %176 = arith.divf %174, %175 : vector<2x128xf32>
    %177 = arith.mulf %168, %150 : vector<2x128xf32>
    %178 = arith.mulf %162, %170 : vector<2x128xf32>
    %179 = arith.addf %177, %178 : vector<2x128xf32>
    %180 = math.tanh %179 : vector<2x128xf32>
    %181 = arith.mulf %176, %180 : vector<2x128xf32>
    %c10 = arith.constant 10 : index
    %c0_39 = arith.constant 0 : index
    %182 = vector.load %arg5[%c10, %c0_39] : memref<16x128xf32, #tpu.memory_space<vmem>>, vector<2x128xf32>
    tpu.vector_store %arg5[%c10, %c0_39], %181 {strides = array<i32>} : memref<16x128xf32, #tpu.memory_space<vmem>>, vector<2x128xf32>,
    %183 = vector.extract_strided_slice %5 {offsets = [12, 0], sizes = [2, 512], strides = [1, 1]} : vector<16x512xf32> to vector<2x512xf32>
    %cst_40 = arith.constant dense<0.000000e+00> : vector<2x512xf32>
    %184 = tpu.matmul %181, %6, %cst_40 {dimension_numbers = #tpu.dot_dimension_numbers<[1], [0], [0], [1], [0, 0, 1, 1], [], []>} : vector<2x128xf32>, vector<128x512xf32>, vector<2x512xf32> -> vector<2x512xf32>
    %185 = arith.addf %183, %184 : vector<2x512xf32>
    %186 = vector.extract_strided_slice %185 {offsets = [0, 0], sizes = [2, 128], strides = [1, 1]} : vector<2x512xf32> to vector<2x128xf32>
    %187 = arith.negf %186 : vector<2x128xf32>
    %188 = math.exp %187 : vector<2x128xf32>
    %cst_41 = arith.constant 1.000000e+00 : f32
    %189 = vector.broadcast %cst_41 : f32 to vector<2x128xf32>
    %190 = arith.addf %189, %188 : vector<2x128xf32>
    %191 = arith.divf %189, %190 : vector<2x128xf32>
    %192 = vector.extract_strided_slice %185 {offsets = [0, 128], sizes = [2, 128], strides = [1, 1]} : vector<2x512xf32> to vector<2x128xf32>
    %193 = arith.negf %192 : vector<2x128xf32>
    %194 = math.exp %193 : vector<2x128xf32>
    %cst_42 = arith.constant 1.000000e+00 : f32
    %195 = vector.broadcast %cst_42 : f32 to vector<2x128xf32>
    %196 = arith.addf %195, %194 : vector<2x128xf32>
    %197 = arith.divf %195, %196 : vector<2x128xf32>
    %198 = vector.extract_strided_slice %185 {offsets = [0, 256], sizes = [2, 128], strides = [1, 1]} : vector<2x512xf32> to vector<2x128xf32>
    %199 = math.tanh %198 : vector<2x128xf32>
    %200 = vector.extract_strided_slice %185 {offsets = [0, 384], sizes = [2, 128], strides = [1, 1]} : vector<2x512xf32> to vector<2x128xf32>
    %201 = arith.negf %200 : vector<2x128xf32>
    %202 = math.exp %201 : vector<2x128xf32>
    %cst_43 = arith.constant 1.000000e+00 : f32
    %203 = vector.broadcast %cst_43 : f32 to vector<2x128xf32>
    %204 = arith.addf %203, %202 : vector<2x128xf32>
    %205 = arith.divf %203, %204 : vector<2x128xf32>
    %206 = arith.mulf %197, %179 : vector<2x128xf32>
    %207 = arith.mulf %191, %199 : vector<2x128xf32>
    %208 = arith.addf %206, %207 : vector<2x128xf32>
    %209 = math.tanh %208 : vector<2x128xf32>
    %210 = arith.mulf %205, %209 : vector<2x128xf32>
    %c12 = arith.constant 12 : index
    %c0_44 = arith.constant 0 : index
    %211 = vector.load %arg5[%c12, %c0_44] : memref<16x128xf32, #tpu.memory_space<vmem>>, vector<2x128xf32>
    tpu.vector_store %arg5[%c12, %c0_44], %210 {strides = array<i32>} : memref<16x128xf32, #tpu.memory_space<vmem>>, vector<2x128xf32>,
    %212 = vector.extract_strided_slice %5 {offsets = [14, 0], sizes = [2, 512], strides = [1, 1]} : vector<16x512xf32> to vector<2x512xf32>
    %cst_45 = arith.constant dense<0.000000e+00> : vector<2x512xf32>
    %213 = tpu.matmul %210, %6, %cst_45 {dimension_numbers = #tpu.dot_dimension_numbers<[1], [0], [0], [1], [0, 0, 1, 1], [], []>} : vector<2x128xf32>, vector<128x512xf32>, vector<2x512xf32> -> vector<2x512xf32>
    %214 = arith.addf %212, %213 : vector<2x512xf32>
    %215 = vector.extract_strided_slice %214 {offsets = [0, 0], sizes = [2, 128], strides = [1, 1]} : vector<2x512xf32> to vector<2x128xf32>
    %216 = arith.negf %215 : vector<2x128xf32>
    %217 = math.exp %216 : vector<2x128xf32>
    %cst_46 = arith.constant 1.000000e+00 : f32
    %218 = vector.broadcast %cst_46 : f32 to vector<2x128xf32>
    %219 = arith.addf %218, %217 : vector<2x128xf32>
    %220 = arith.divf %218, %219 : vector<2x128xf32>
    %221 = vector.extract_strided_slice %214 {offsets = [0, 128], sizes = [2, 128], strides = [1, 1]} : vector<2x512xf32> to vector<2x128xf32>
    %222 = arith.negf %221 : vector<2x128xf32>
    %223 = math.exp %222 : vector<2x128xf32>
    %cst_47 = arith.constant 1.000000e+00 : f32
    %224 = vector.broadcast %cst_47 : f32 to vector<2x128xf32>
    %225 = arith.addf %224, %223 : vector<2x128xf32>
    %226 = arith.divf %224, %225 : vector<2x128xf32>
    %227 = vector.extract_strided_slice %214 {offsets = [0, 256], sizes = [2, 128], strides = [1, 1]} : vector<2x512xf32> to vector<2x128xf32>
    %228 = math.tanh %227 : vector<2x128xf32>
    %229 = vector.extract_strided_slice %214 {offsets = [0, 384], sizes = [2, 128], strides = [1, 1]} : vector<2x512xf32> to vector<2x128xf32>
    %230 = arith.negf %229 : vector<2x128xf32>
    %231 = math.exp %230 : vector<2x128xf32>
    %cst_48 = arith.constant 1.000000e+00 : f32
    %232 = vector.broadcast %cst_48 : f32 to vector<2x128xf32>
    %233 = arith.addf %232, %231 : vector<2x128xf32>
    %234 = arith.divf %232, %233 : vector<2x128xf32>
    %235 = arith.mulf %226, %208 : vector<2x128xf32>
    %236 = arith.mulf %220, %228 : vector<2x128xf32>
    %237 = arith.addf %235, %236 : vector<2x128xf32>
    %238 = math.tanh %237 : vector<2x128xf32>
    %239 = arith.mulf %234, %238 : vector<2x128xf32>
    %c14 = arith.constant 14 : index
    %c0_49 = arith.constant 0 : index
    %240 = vector.load %arg5[%c14, %c0_49] : memref<16x128xf32, #tpu.memory_space<vmem>>, vector<2x128xf32>
    tpu.vector_store %arg5[%c14, %c0_49], %239 {strides = array<i32>} : memref<16x128xf32, #tpu.memory_space<vmem>>, vector<2x128xf32>,
    return
  }
  func.func @transform_0(%arg0: i32) -> (i32, i32) {
    %c0_i32 = arith.constant 0 : i32
    %c0_i32_0 = arith.constant 0 : i32
    %c0_i32_1 = arith.constant 0 : i32
    return %c0_i32, %c0_i32_0 : i32, i32
  }
  func.func @transform_1(%arg0: i32) -> (i32, i32) {
    %c0_i32 = arith.constant 0 : i32
    %c0_i32_0 = arith.constant 0 : i32
    %c0_i32_1 = arith.constant 0 : i32
    return %c0_i32, %c0_i32_0 : i32, i32
  }
  func.func @transform_2(%arg0: i32) -> (i32, i32) {
    %c0_i32 = arith.constant 0 : i32
    %c0_i32_0 = arith.constant 0 : i32
    %c0_i32_1 = arith.constant 0 : i32
    return %c0_i32, %c0_i32_0 : i32, i32
  }
  func.func @transform_3(%arg0: i32) -> (i32, i32) {
    %c0_i32 = arith.constant 0 : i32
    %c0_i32_0 = arith.constant 0 : i32
    %c0_i32_1 = arith.constant 0 : i32
    return %c0_i32, %c0_i32_0 : i32, i32
  }
  func.func @transform_4(%arg0: i32) -> (i32, i32) {
    %c0_i32 = arith.constant 0 : i32
    %c0_i32_0 = arith.constant 0 : i32
    %c0_i32_1 = arith.constant 0 : i32
    return %c0_i32, %c0_i32_0 : i32, i32
  }
}

</mosaic_0001>

<bundles_post_ra>
// kernel: tpu_custom_call.1
= control target key start
LH: loop header
LB: loop body
LE: loop exit
PB: predicated region body
PF: predicated region fallthrough
CT: control target
= control target key end

     0   :  { %9 = vsyncpa [#allocation3], 0  ;;  %s3201_s0 = inlined_call_operand.hbm [shape: f32[16,128], index: 0, kind: input, shape index: {}]   ;;  %s3202_s1 = inlined_call_operand.hbm [shape: f32[128,512], index: 1, kind: input, shape index: {}]   ;;  %s3203_s2 = inlined_call_operand.hbm [shape: f32[128,512], index: 2, kind: input, shape index: {}]   ;;  %s3204_s3 = inlined_call_operand.vmem [shape: f32[1,512], index: 3, kind: input, shape index: {}]   ;;  %s3205_s4 = inlined_call_operand.hbm [shape: f32[16,128], index: 4, kind: output, shape index: {}]  }
   0x1   :  { %10 = vsyncpa [#allocation6], 0 }
   0x2   :  { %11 = vsyncpa [#allocation4], 0  ;;  %s2690_s15 = smov [#allocation5]   ;;  %s2596_s19 = scalar_lea.hbm %s3202_s1, 8192 }
   0x3   :  { %s29_s16 = sshll.u32 %s2690_s15, 4  ;;  %p2597_p0 = scmp.ne.s32.totalorder %s3202_s1, %s2596_s19  ;;  %s30_s16 = int_to_ptr.vmem [resolvable:$true] %s29_s16 }
   0x4   :  { %p2600_p1 = scmp.lt.u32.totalorder %s2596_s19, %s3202_s1 }
   0x6   :  { %p2602_p2 = pnand %p2600_p1, %p2597_p0 }
   0x8   :  { %2605 = shalt.err (!%p2602_p2)
}
   0x9   :  { %s2606_s24 = scalar_lea.vmem %s30_s16, 8192  ;;  %p2611_p4 = scmp.lt.s32.totalorder %s30_s16, %s30_s16 }
   0xa   :  { %p2607_p3 = scmp.ne.s32.totalorder %s30_s16, %s2606_s24  ;;  %p2612_p5 = scmp.lt.s32.totalorder %s2606_s24, %s2606_s24 }
   0xc   :  { %p2613_p6 = por %p2612_p5, %p2611_p4 }
   0xe   :  { %p2614_p7 = pnand %p2613_p6, %p2607_p3 }
  0x10   :  { %2617 = shalt.err (!%p2614_p7)
}
  0x11   :  { %s2691_s25 = smov 512   ;;  %s2692_s26 = smov 32  }
  0x12   :  { %35 = dma.hbm_to_vmem [thread:$0]  %s3202_s1, 8192, %s30_s16, [#allocation6], %s2691_s25, %s2691_s25, %s2692_s26  }
  0x13   :  { %s2693_s29 = smov [#allocation2]   ;;  %s2618_s7 = scalar_lea.hbm %s3201_s0, 256 }
  0x14   :  { %s17_s30 = sshll.u32 %s2693_s29, 4  ;;  %p2619_p8 = scmp.ne.s32.totalorder %s3201_s0, %s2618_s7  ;;  %s18_s30 = int_to_ptr.vmem [resolvable:$true] %s17_s30 }
  0x15   :  { %p2622_p9 = scmp.lt.u32.totalorder %s2618_s7, %s3201_s0 }
  0x17   :  { %p2624_p10 = pnand %p2622_p9, %p2619_p8 }
  0x19   :  { %2627 = shalt.err (!%p2624_p10)
}
  0x1a   :  { %s2628_s12 = scalar_lea.vmem %s18_s30, 256  ;;  %p2633_p12 = scmp.lt.s32.totalorder %s18_s30, %s18_s30 }
  0x1b   :  { %p2629_p11 = scmp.ne.s32.totalorder %s18_s30, %s2628_s12  ;;  %p2634_p13 = scmp.lt.s32.totalorder %s2628_s12, %s2628_s12 }
  0x1d   :  { %p2635_p0 = por %p2634_p13, %p2633_p12 }
  0x1f   :  { %p2636_p1 = pnand %p2635_p0, %p2629_p11 }
  0x21   :  { %2639 = shalt.err (!%p2636_p1)
}
  0x22   :  { %s2694_s1 = smov 128   ;;  %s2695_s13 = smov 8  }
  0x23   :  { %23 = dma.hbm_to_vmem [thread:$0]  %s3201_s0, 256, %s18_s30, [#allocation3], %s2694_s1, %s2694_s1, %s2695_s13  }
  0x24   :  { %s2696_s16 = smov [#allocation7]   ;;  %s2640_s20 = scalar_lea.hbm %s3203_s2, 8192 }
  0x25   :  { %s41_s17 = sshll.u32 %s2696_s16, 4  ;;  %p2641_p2 = scmp.ne.s32.totalorder %s3203_s2, %s2640_s20  ;;  %s42_s17 = int_to_ptr.vmem [resolvable:$true] %s41_s17 }
  0x26   :  { %p2644_p3 = scmp.lt.u32.totalorder %s2640_s20, %s3203_s2 }
  0x28   :  { %p2646_p4 = pnand %p2644_p3, %p2641_p2 }
  0x2a   :  { %2649 = shalt.err (!%p2646_p4)
}
  0x2b   :  { %s2650_s27 = scalar_lea.vmem %s42_s17, 8192  ;;  %p2655_p6 = scmp.lt.s32.totalorder %s42_s17, %s42_s17 }
  0x2c   :  { %p2651_p5 = scmp.ne.s32.totalorder %s42_s17, %s2650_s27  ;;  %p2656_p7 = scmp.lt.s32.totalorder %s2650_s27, %s2650_s27 }
  0x2e   :  { %p2657_p8 = por %p2656_p7, %p2655_p6 }
  0x30   :  { %p2658_p9 = pnand %p2657_p8, %p2651_p5 }
  0x32   :  { %2661 = shalt.err (!%p2658_p9)
}
  0x33   :  { %47 = dma.hbm_to_vmem [thread:$0]  %s3203_s2, 8192, %s42_s17, [#allocation6], %s2691_s25, %s2691_s25, %s2692_s26  }
  0x34   :  { %2684 = dma.done.wait [#allocation3], 256  }
  0x35   :  { %2685 = vsyncadd [#allocation3], 4294967040 }
  0x36   :  { %2686 = dma.done.wait [#allocation6], 16384  }
  0x37   :  { %2687 = vsyncadd [#allocation6], 4294950912  ;;  %v2697_v0 = vmov 0.0   ;;  %v62_v1 = vld [vmem:[#allocation5 + $0x8] sm:$0xff]  ;;  %v64_v3 = vld [vmem:[#allocation5 + $0x18] sm:$0xff] }
  0x38   :  { %211 = vmatprep.mubr.f32.mxu0 %v2697_v0  ;;  %288 = vmatprep.mubr.f32.mxu1 %v2697_v0  ;;  %v66_v2 = vld [vmem:[#allocation5 + $0x28] sm:$0xff]  ;;  %v68_v5 = vld [vmem:[#allocation5 + $0x38] sm:$0xff]  ;;  %v61_v6 = vld [vmem:[#allocation5] sm:$0xff] }
  0x39   :  { %v1883_v4 = vpack.c.bf16 %v66_v2, %v62_v1  ;;  %v65_v7 = vld [vmem:[#allocation5 + $0x20] sm:$0xff]  ;;  %v1915_v8 = vpack.c.bf16 %v68_v5, %v64_v3  ;;  %v63_v10 = vld [vmem:[#allocation5 + $0x10] sm:$0xff]  ;;  %v70_v12 = vld [vmem:[#allocation5 + $0x48] sm:$0xff] }
  0x3a   :  { %v1885_v9 = vpack.c.bf16 %v65_v7, %v61_v6  ;;  %v67_v11 = vld [vmem:[#allocation5 + $0x30] sm:$0xff]  ;;  %v74_v14 = vld [vmem:[#allocation5 + $0x68] sm:$0xff]  ;;  %v72_v15 = vld [vmem:[#allocation5 + $0x58] sm:$0xff] }
  0x3b   :  { %1884 = vmatprep.subr.bf16.mxu0 %v1883_v4  ;;  %v1917_v13 = vpack.c.bf16 %v67_v11, %v63_v10  ;;  %v76_v16 = vld [vmem:[#allocation5 + $0x78] sm:$0xff]  ;;  %1916 = vmatprep.subr.bf16.mxu1 %v1915_v8  ;;  %v1887_v17 = vpack.c.bf16 %v74_v14, %v70_v12  ;;  %v69_v19 = vld [vmem:[#allocation5 + $0x40] sm:$0xff]  ;;  %v71_v21 = vld [vmem:[#allocation5 + $0x50] sm:$0xff] }
  0x3c   :  { %1886 = vmatpush1.bf16.msra.mxu0 %v1885_v9  ;;  %v1919_v18 = vpack.c.bf16 %v76_v16, %v72_v15  ;;  %v73_v20 = vld [vmem:[#allocation5 + $0x60] sm:$0xff]  ;;  %v75_v23 = vld [vmem:[#allocation5 + $0x70] sm:$0xff]  ;;  %v78_v24 = vld [vmem:[#allocation5 + $0x88] sm:$0xff] }
  0x3d   :  { %1918 = vmatpush1.bf16.msra.mxu1 %v1917_v13  ;;  %v1889_v22 = vpack.c.bf16 %v73_v20, %v69_v19  ;;  %v82_v25 = vld [vmem:[#allocation5 + $0xa8] sm:$0xff]  ;;  %1888 = vmatprep.subr.bf16.mxu0 %v1887_v17  ;;  %v1921_v26 = vpack.c.bf16 %v75_v23, %v71_v21  ;;  %v80_v28 = vld [vmem:[#allocation5 + $0x98] sm:$0xff]  ;;  %v77_v30 = vld [vmem:[#allocation5 + $0x80] sm:$0xff] }
  0x3e   :  { %1920 = vmatprep.subr.bf16.mxu1 %v1919_v18  ;;  %v1891_v27 = vpack.c.bf16 %v82_v25, %v78_v24  ;;  %v84_v29 = vld [vmem:[#allocation5 + $0xb8] sm:$0xff]  ;;  %v81_v32 = vld [vmem:[#allocation5 + $0xa0] sm:$0xff]  ;;  %v79_v33 = vld [vmem:[#allocation5 + $0x90] sm:$0xff] }
  0x3f   :  { %v1923_v31 = vpack.c.bf16 %v84_v29, %v80_v28  ;;  %v83_v34 = vld [vmem:[#allocation5 + $0xb0] sm:$0xff]  ;;  %v1893_v35 = vpack.c.bf16 %v81_v32, %v77_v30  ;;  %v86_v36 = vld [vmem:[#allocation5 + $0xc8] sm:$0xff]  ;;  %v88_v38 = vld [vmem:[#allocation5 + $0xd8] sm:$0xff] }
  0x40   :  { %1890 = vmatpush1.bf16.msra.mxu0 %v1889_v22  ;;  %v90_v37 = vld [vmem:[#allocation5 + $0xe8] sm:$0xff]  ;;  %v1925_v39 = vpack.c.bf16 %v83_v34, %v79_v33  ;;  %v92_v41 = vld [vmem:[#allocation5 + $0xf8] sm:$0xff]  ;;  %v85_v42 = vld [vmem:[#allocation5 + $0xc0] sm:$0xff] }
  0x41   :  { %1922 = vmatpush1.bf16.msra.mxu1 %v1921_v26  ;;  %1892 = vmatprep.subr.bf16.mxu0 %v1891_v27  ;;  %v1895_v40 = vpack.c.bf16 %v90_v37, %v86_v36  ;;  %v89_v43 = vld [vmem:[#allocation5 + $0xe0] sm:$0xff]  ;;  %v1927_v44 = vpack.c.bf16 %v92_v41, %v88_v38  ;;  %v87_v45 = vld [vmem:[#allocation5 + $0xd0] sm:$0xff]  ;;  %v94_v47 = vld [vmem:[#allocation5 + $0x108] sm:$0xff] }
  0x42   :  { %1924 = vmatprep.subr.bf16.mxu1 %v1923_v31  ;;  %v91_v46 = vld [vmem:[#allocation5 + $0xf0] sm:$0xff]  ;;  %v98_v48 = vld [vmem:[#allocation5 + $0x128] sm:$0xff]  ;;  %v96_v49 = vld [vmem:[#allocation5 + $0x118] sm:$0xff]  ;;  %v1897_v51 = vpack.c.bf16 %v89_v43, %v85_v42 }
  0x43   :  { %v100_v50 = vld [vmem:[#allocation5 + $0x138] sm:$0xff]  ;;  %v1929_v52 = vpack.c.bf16 %v91_v46, %v87_v45  ;;  %v1899_v53 = vpack.c.bf16 %v98_v48, %v94_v47  ;;  %v93_v54 = vld [vmem:[#allocation5 + $0x100] sm:$0xff]  ;;  %v95_v56 = vld [vmem:[#allocation5 + $0x110] sm:$0xff] }
  0x44   :  { %1894 = vmatpush1.bf16.msra.mxu0 %v1893_v35  ;;  %v97_v55 = vld [vmem:[#allocation5 + $0x120] sm:$0xff]  ;;  %v1931_v57 = vpack.c.bf16 %v100_v50, %v96_v49  ;;  %v99_v58 = vld [vmem:[#allocation5 + $0x130] sm:$0xff]  ;;  %v102_v59 = vld [vmem:[#allocation5 + $0x148] sm:$0xff] }
  0x45   :  { %1926 = vmatpush1.bf16.msra.mxu1 %v1925_v39  ;;  %1896 = vmatprep.subr.bf16.mxu0 %v1895_v40  ;;  %v106_v60 = vld [vmem:[#allocation5 + $0x168] sm:$0xff]  ;;  %v104_v61 = vld [vmem:[#allocation5 + $0x158] sm:$0xff]  ;;  %v1901_v63 = vpack.c.bf16 %v97_v55, %v93_v54  ;;  %v1933_v1 = vpack.c.bf16 %v99_v58, %v95_v56  ;;  %v101_v3 = vld [vmem:[#allocation5 + $0x140] sm:$0xff] }
  0x46   :  { %1928 = vmatprep.subr.bf16.mxu1 %v1927_v44  ;;  %v108_v62 = vld [vmem:[#allocation5 + $0x178] sm:$0xff]  ;;  %v1903_v2 = vpack.c.bf16 %v106_v60, %v102_v59  ;;  %v105_v4 = vld [vmem:[#allocation5 + $0x160] sm:$0xff]  ;;  %v103_v5 = vld [vmem:[#allocation5 + $0x150] sm:$0xff] }
  0x47   :  { %v1935_v6 = vpack.c.bf16 %v108_v62, %v104_v61  ;;  %v107_v7 = vld [vmem:[#allocation5 + $0x170] sm:$0xff]  ;;  %v110_v8 = vld [vmem:[#allocation5 + $0x188] sm:$0xff]  ;;  %v112_v10 = vld [vmem:[#allocation5 + $0x198] sm:$0xff]  ;;  %v1905_v12 = vpack.c.bf16 %v105_v4, %v101_v3 }
  0x48   :  { %1898 = vmatpush1.bf16.msra.mxu0 %v1897_v51  ;;  %v114_v9 = vld [vmem:[#allocation5 + $0x1a8] sm:$0xff]  ;;  %v116_v11 = vld [vmem:[#allocation5 + $0x1b8] sm:$0xff]  ;;  %v1937_v13 = vpack.c.bf16 %v107_v7, %v103_v5  ;;  %v109_v15 = vld [vmem:[#allocation5 + $0x180] sm:$0xff] }
  0x49   :  { %1930 = vmatpush1.bf16.msra.mxu1 %v1929_v52  ;;  %1900 = vmatprep.subr.bf16.mxu0 %v1899_v53  ;;  %v1907_v14 = vpack.c.bf16 %v114_v9, %v110_v8  ;;  %v113_v16 = vld [vmem:[#allocation5 + $0x1a0] sm:$0xff]  ;;  %v111_v17 = vld [vmem:[#allocation5 + $0x190] sm:$0xff]  ;;  %v1939_v18 = vpack.c.bf16 %v116_v11, %v112_v10  ;;  %v118_v20 = vld [vmem:[#allocation5 + $0x1c8] sm:$0xff] }
  0x4a   :  { %1932 = vmatprep.subr.bf16.mxu1 %v1931_v57  ;;  %v115_v19 = vld [vmem:[#allocation5 + $0x1b0] sm:$0xff]  ;;  %v122_v21 = vld [vmem:[#allocation5 + $0x1e8] sm:$0xff]  ;;  %v120_v22 = vld [vmem:[#allocation5 + $0x1d8] sm:$0xff]  ;;  %v1909_v24 = vpack.c.bf16 %v113_v16, %v109_v15 }
  0x4b   :  { %v124_v23 = vld [vmem:[#allocation5 + $0x1f8] sm:$0xff]  ;;  %v1941_v25 = vpack.c.bf16 %v115_v19, %v111_v17  ;;  %v1911_v26 = vpack.c.bf16 %v122_v21, %v118_v20  ;;  %v117_v27 = vld [vmem:[#allocation5 + $0x1c0] sm:$0xff]  ;;  %v119_v29 = vld [vmem:[#allocation5 + $0x1d0] sm:$0xff] }
  0x4c   :  { %1902 = vmatpush1.bf16.msra.mxu0 %v1901_v63  ;;  %v121_v28 = vld [vmem:[#allocation5 + $0x1e0] sm:$0xff]  ;;  %v1943_v30 = vpack.c.bf16 %v124_v23, %v120_v22  ;;  %v123_v31 = vld [vmem:[#allocation5 + $0x1f0] sm:$0xff]  ;;  %v302_v32 = vld [vmem:[#allocation7 + $0x8] sm:$0xff] }
  0x4d   :  { %1934 = vmatpush1.bf16.msra.mxu1 %v1933_v1  ;;  %1904 = vmatprep.subr.bf16.mxu0 %v1903_v2  ;;  %v306_v33 = vld [vmem:[#allocation7 + $0x28] sm:$0xff]  ;;  %v304_v34 = vld [vmem:[#allocation7 + $0x18] sm:$0xff]  ;;  %v1913_v36 = vpack.c.bf16 %v121_v28, %v117_v27  ;;  %v1945_v37 = vpack.c.bf16 %v123_v31, %v119_v29  ;;  %v301_v39 = vld [vmem:[#allocation7] sm:$0xff] }
  0x4e   :  { %1936 = vmatprep.subr.bf16.mxu1 %v1935_v6  ;;  %v308_v35 = vld [vmem:[#allocation7 + $0x38] sm:$0xff]  ;;  %v2771_v38 = vpack.c.bf16 %v306_v33, %v302_v32  ;;  %v305_v40 = vld [vmem:[#allocation7 + $0x20] sm:$0xff]  ;;  %v303_v41 = vld [vmem:[#allocation7 + $0x10] sm:$0xff] }
  0x4f   :  { %v2773_v42 = vpack.c.bf16 %v308_v35, %v304_v34  ;;  %v307_v43 = vld [vmem:[#allocation7 + $0x30] sm:$0xff]  ;;  %v310_v44 = vld [vmem:[#allocation7 + $0x48] sm:$0xff]  ;;  %v312_v46 = vld [vmem:[#allocation7 + $0x58] sm:$0xff]  ;;  %v2775_v49 = vpack.c.bf16 %v305_v40, %v301_v39 }
  0x50   :  { %1906 = vmatpush1.bf16.msra.mxu0 %v1905_v12  ;;  %v314_v45 = vld [vmem:[#allocation7 + $0x68] sm:$0xff]  ;;  %v316_v47 = vld [vmem:[#allocation7 + $0x78] sm:$0xff]  ;;  %v59_v48 = vld [vmem:[#allocation2] sm:$0xff]  ;;  %v2778_v50 = vpack.c.bf16 %v307_v43, %v303_v41 }
  0x51   :  { %1938 = vmatpush1.bf16.msra.mxu1 %v1937_v13  ;;  %1908 = vmatprep.subr.bf16.mxu0 %v1907_v14  ;;  %v2780_v51 = vpack.c.bf16 %v314_v45, %v310_v44  ;;  %v309_v52 = vld [vmem:[#allocation7 + $0x40] sm:$0xff]  ;;  %v311_v54 = vld [vmem:[#allocation7 + $0x50] sm:$0xff]  ;;  %v2783_v55 = vpack.c.bf16 %v316_v47, %v312_v46  ;;  %v318_v57 = vld [vmem:[#allocation7 + $0x88] sm:$0xff] }
  0x52   :  { %1940 = vmatprep.subr.bf16.mxu1 %v1939_v18  ;;  %v313_v53 = vld [vmem:[#allocation7 + $0x60] sm:$0xff]  ;;  %v315_v56 = vld [vmem:[#allocation7 + $0x70] sm:$0xff]  ;;  %v322_v58 = vld [vmem:[#allocation7 + $0xa8] sm:$0xff] }
  0x53   :  { %v320_v59 = vld [vmem:[#allocation7 + $0x98] sm:$0xff]  ;;  %v2786_v61 = vpack.c.bf16 %v313_v53, %v309_v52  ;;  %v2790_v62 = vpack.c.bf16 %v315_v56, %v311_v54  ;;  %v2792_v63 = vpack.c.bf16 %v322_v58, %v318_v57  ;;  %v317_v1 = vld [vmem:[#allocation7 + $0x80] sm:$0xff]  ;;  %v319_v3 = vld [vmem:[#allocation7 + $0x90] sm:$0xff] }
  0x54   :  { %1910 = vmatpush1.bf16.msra.mxu0 %v1909_v24  ;;  %v324_v60 = vld [vmem:[#allocation7 + $0xb8] sm:$0xff]  ;;  %v321_v2 = vld [vmem:[#allocation7 + $0xa0] sm:$0xff]  ;;  %v323_v5 = vld [vmem:[#allocation7 + $0xb0] sm:$0xff] }
  0x55   :  { %1942 = vmatpush1.bf16.msra.mxu1 %v1941_v25  ;;  %1912 = vmatprep.subr.bf16.mxu0 %v1911_v26  ;;  %v2795_v4 = vpack.c.bf16 %v324_v60, %v320_v59  ;;  %v326_v6 = vld [vmem:[#allocation7 + $0xc8] sm:$0xff]  ;;  %v328_v8 = vld [vmem:[#allocation7 + $0xd8] sm:$0xff]  ;;  %v2800_v10 = vpack.c.bf16 %v321_v2, %v317_v1  ;;  %v2804_v12 = vpack.c.bf16 %v323_v5, %v319_v3  ;;  %v325_v14 = vld [vmem:[#allocation7 + $0xc0] sm:$0xff] }
  0x56   :  { %1944 = vmatprep.subr.bf16.mxu1 %v1943_v30  ;;  %v330_v7 = vld [vmem:[#allocation7 + $0xe8] sm:$0xff]  ;;  %v332_v9 = vld [vmem:[#allocation7 + $0xf8] sm:$0xff]  ;;  %v329_v15 = vld [vmem:[#allocation7 + $0xe0] sm:$0xff] }
  0x57   :  { %v60_v11 = vld [vmem:[#allocation2 + $0x8] sm:$0xff]  ;;  %v2806_v13 = vpack.c.bf16 %v330_v7, %v326_v6  ;;  %v327_v16 = vld [vmem:[#allocation7 + $0xd0] sm:$0xff]  ;;  %v2809_v17 = vpack.c.bf16 %v332_v9, %v328_v8  ;;  %v334_v19 = vld [vmem:[#allocation7 + $0x108] sm:$0xff]  ;;  %v2813_v23 = vpack.c.bf16 %v329_v15, %v325_v14 }
  0x58   :  { %1914 = vmatpush1.bf16.msra.mxu0 %v1913_v36  ;;  %v331_v18 = vld [vmem:[#allocation7 + $0xf0] sm:$0xff]  ;;  %v338_v20 = vld [vmem:[#allocation7 + $0x128] sm:$0xff]  ;;  %v336_v21 = vld [vmem:[#allocation7 + $0x118] sm:$0xff] }
  0x59   :  { %1946 = vmatpush1.bf16.msra.mxu1 %v1945_v37  ;;  %1948 = vmatprep.subr.bf16.mxu0 %v2771_v38  ;;  %v340_v22 = vld [vmem:[#allocation7 + $0x138] sm:$0xff]  ;;  %v2818_v24 = vpack.c.bf16 %v331_v18, %v327_v16  ;;  %v2820_v25 = vpack.c.bf16 %v338_v20, %v334_v19  ;;  %v333_v26 = vld [vmem:[#allocation7 + $0x100] sm:$0xff]  ;;  %v335_v28 = vld [vmem:[#allocation7 + $0x110] sm:$0xff]  ;;  %v127_v20 = vlaneseq }
  0x5a   :  { %1980 = vmatprep.subr.bf16.mxu1 %v2773_v42  ;;  %v337_v27 = vld [vmem:[#allocation7 + $0x120] sm:$0xff]  ;;  %v2823_v29 = vpack.c.bf16 %v340_v22, %v336_v21  ;;  %v339_v30 = vld [vmem:[#allocation7 + $0x130] sm:$0xff]  ;;  %v342_v31 = vld [vmem:[#allocation7 + $0x148] sm:$0xff] }
  0x5b   :  { %212 = vmatmul.mubr.f32.vlgmr.msra.gmra.mrb[0].mxu0 %v59_v48  ;;  %v346_v32 = vld [vmem:[#allocation7 + $0x168] sm:$0xff]  ;;  %v344_v33 = vld [vmem:[#allocation7 + $0x158] sm:$0xff]  ;;  %v2826_v35 = vpack.c.bf16 %v337_v27, %v333_v26  ;;  %v2830_v36 = vpack.c.bf16 %v339_v30, %v335_v28  ;;  %v341_v39 = vld [vmem:[#allocation7 + $0x140] sm:$0xff]  ;;  %v128_v21 = vshrl.u32 %v127_v20, 7 }
  0x5c   :  { %289 = vmatmul.mubr.f32.vlgmr.msra.gmra.mrb[0].mxu1 %v59_v48  ;;  %1950 = vmatpush1.bf16.msra.mxu0 %v2775_v49  ;;  %v348_v34 = vld [vmem:[#allocation7 + $0x178] sm:$0xff]  ;;  %v2832_v37 = vpack.c.bf16 %v346_v32, %v342_v31  ;;  %v345_v40 = vld [vmem:[#allocation7 + $0x160] sm:$0xff]  ;;  %v343_v41 = vld [vmem:[#allocation7 + $0x150] sm:$0xff] }
  0x5d   :  { %1982 = vmatpush1.bf16.msra.mxu1 %v2778_v50  ;;  %1952 = vmatprep.subr.bf16.mxu0 %v2780_v51  ;;  %v2835_v43 = vpack.c.bf16 %v348_v34, %v344_v33  ;;  %v347_v44 = vld [vmem:[#allocation7 + $0x170] sm:$0xff]  ;;  %v350_v45 = vld [vmem:[#allocation7 + $0x188] sm:$0xff]  ;;  %v352_v47 = vld [vmem:[#allocation7 + $0x198] sm:$0xff]  ;;  %v2838_v52 = vpack.c.bf16 %v345_v40, %v341_v39  ;;  %v129_v28 = vsub.s32 0, %v128_v21  ;;  %v133_v32 = vsub.s32 1, %v128_v21 }
  0x5e   :  { %1984 = vmatprep.subr.bf16.mxu1 %v2783_v55  ;;  %217 = vmatprep.mubr.f32.mxu0 %v2697_v0  ;;  %v354_v46 = vld [vmem:[#allocation7 + $0x1a8] sm:$0xff]  ;;  %v356_v48 = vld [vmem:[#allocation7 + $0x1b8] sm:$0xff]  ;;  %v2842_v53 = vpack.c.bf16 %v347_v44, %v343_v41  ;;  %v349_v56 = vld [vmem:[#allocation7 + $0x180] sm:$0xff]  ;;  %v137_v33 = vsub.s32 2, %v128_v21  ;;  %v141_v34 = vsub.s32 3, %v128_v21 }
  0x5f   :  { %294 = vmatprep.mubr.f32.mxu1 %v2697_v0  ;;  %218 = vmatmul.mubr.f32.gmra.mrb[2].mxu0 %v60_v11  ;;  %v2844_v54 = vpack.c.bf16 %v354_v46, %v350_v45  ;;  %v353_v57 = vld [vmem:[#allocation7 + $0x1a0] sm:$0xff]  ;;  %v351_v58 = vld [vmem:[#allocation7 + $0x190] sm:$0xff]  ;;  %v2847_v59 = vpack.c.bf16 %v356_v48, %v352_v47  ;;  %v358_v1 = vld [vmem:[#allocation7 + $0x1c8] sm:$0xff] }
  0x60   :  { %1954 = vmatpush1.bf16.msra.mxu0 %v2786_v61  ;;  %295 = vmatmul.mubr.f32.gmra.mrb[2].mxu1 %v60_v11  ;;  %v355_v60 = vld [vmem:[#allocation7 + $0x1b0] sm:$0xff]  ;;  %v362_v2 = vld [vmem:[#allocation7 + $0x1e8] sm:$0xff]  ;;  %v360_v3 = vld [vmem:[#allocation7 + $0x1d8] sm:$0xff]  ;;  %v2850_v6 = vpack.c.bf16 %v353_v57, %v349_v56 }
  0x61   :  { %1986 = vmatpush1.bf16.msra.mxu1 %v2790_v62  ;;  %1956 = vmatprep.subr.bf16.mxu0 %v2792_v63  ;;  %v364_v5 = vld [vmem:[#allocation7 + $0x1f8] sm:$0xff]  ;;  %v2854_v7 = vpack.c.bf16 %v355_v60, %v351_v58  ;;  %v2856_v8 = vpack.c.bf16 %v362_v2, %v358_v1  ;;  %v357_v9 = vld [vmem:[#allocation7 + $0x1c0] sm:$0xff]  ;;  %v359_v15 = vld [vmem:[#allocation7 + $0x1d0] sm:$0xff] }
  0x62   :  { %1988 = vmatprep.subr.bf16.mxu1 %v2795_v4  ;;  %429 = vmatprep.mubr.f32.mxu0 %v2697_v0  ;;  %v361_v11 = vld [vmem:[#allocation7 + $0x1e0] sm:$0xff]  ;;  %v2859_v14 = vpack.c.bf16 %v364_v5, %v360_v3  ;;  %v363_v16 = vld [vmem:[#allocation7 + $0x1f0] sm:$0xff] }
  0x63   :  { %500 = vmatprep.mubr.f32.mxu1 %v2697_v0  ;;  %v2862_v18 = vpack.c.bf16 %v361_v11, %v357_v9  ;;  %v2866_v19 = vpack.c.bf16 %v363_v16, %v359_v15  ;;  %v125_v31 = vld [vmem:[%s3204_s3] sm:$0xf]  ;;  %s2698_s3 = smov [#allocation8]  }
  0x64   :  { %1958 = vmatpush1.bf16.msra.mxu0 %v2800_v10  ;;  %v130_v39 = vrot.slane %v125_v31, %v129_v28  ;;  %v134_v40 = vrot.slane %v125_v31, %v133_v32  ;;  %v138_v41 = vrot.slane %v125_v31, %v137_v33  ;;  %v142_v45 = vrot.slane %v125_v31, %v141_v34  ;;  %s1846_s26 = sshll.u32 %s2698_s3, 4  ;;  %s1847_s26 = int_to_ptr.vmem [resolvable:$true] %s1846_s26 }
  0x65   :  { %1990 = vmatpush1.bf16.msra.mxu1 %v2804_v12  ;;  %1960 = vmatprep.subr.bf16.mxu0 %v2806_v13  ;;  %s2662_s29 = scalar_lea.vmem %s1847_s26, 256  ;;  %p2667_p11 = scmp.lt.s32.totalorder %s1847_s26, %s1847_s26 }
  0x66   :  { %1992 = vmatprep.subr.bf16.mxu1 %v2809_v17  ;;  %p2663_p10 = scmp.ne.s32.totalorder %s1847_s26, %s2662_s29  ;;  %p2668_p12 = scmp.lt.s32.totalorder %s2662_s29, %s2662_s29 }
  0x68   :  { %1962 = vmatpush1.bf16.msra.mxu0 %v2813_v23  ;;  %p2669_p13 = por %p2668_p12, %p2667_p11 }
  0x69   :  { %1994 = vmatpush1.bf16.msra.mxu1 %v2818_v24  ;;  %1964 = vmatprep.subr.bf16.mxu0 %v2820_v25 }
  0x6a   :  { %1996 = vmatprep.subr.bf16.mxu1 %v2823_v29  ;;  %p2670_p0 = pnand %p2669_p13, %p2663_p10 }
  0x6c   :  { %1966 = vmatpush1.bf16.msra.mxu0 %v2826_v35 }
  0x6d   :  { %1998 = vmatpush1.bf16.msra.mxu1 %v2830_v36  ;;  %1968 = vmatprep.subr.bf16.mxu0 %v2832_v37 }
  0x6e   :  { %2000 = vmatprep.subr.bf16.mxu1 %v2835_v43 }
  0x70   :  { %1970 = vmatpush1.bf16.msra.mxu0 %v2838_v52 }
  0x71   :  { %2002 = vmatpush1.bf16.msra.mxu1 %v2842_v53  ;;  %1972 = vmatprep.subr.bf16.mxu0 %v2844_v54 }
  0x72   :  { %2004 = vmatprep.subr.bf16.mxu1 %v2847_v59 }
  0x74   :  { %1974 = vmatpush1.bf16.msra.mxu0 %v2850_v6 }
  0x75   :  { %2006 = vmatpush1.bf16.msra.mxu1 %v2854_v7  ;;  %1976 = vmatprep.subr.bf16.mxu0 %v2856_v8 }
  0x76   :  { %2008 = vmatprep.subr.bf16.mxu1 %v2859_v14 }
  0x78   :  { %1978 = vmatpush1.bf16.msra.mxu0 %v2862_v18 }
  0x79   :  { %2010 = vmatpush1.bf16.msra.mxu1 %v2866_v19  ;;  %2012 = vmatprep.subr.bf16.mxu0 %v2771_v38 }
  0x7a   :  { %2044 = vmatprep.subr.bf16.mxu1 %v2773_v42 }
  0x7b   :  { %430 = vmatmul.mubr.f32.vlgmr.msra.gmra.mrb[4].mxu0 %v2697_v0 }
  0x7c   :  { %501 = vmatmul.mubr.f32.vlgmr.msra.gmra.mrb[4].mxu1 %v2697_v0  ;;  %2014 = vmatpush1.bf16.msra.mxu0 %v2775_v49 }
  0x7d   :  { %2046 = vmatpush1.bf16.msra.mxu1 %v2778_v50  ;;  %2016 = vmatprep.subr.bf16.mxu0 %v2780_v51 }
  0x7e   :  { %2048 = vmatprep.subr.bf16.mxu1 %v2783_v55  ;;  %600 = vmatprep.mubr.f32.mxu0 %v2697_v0 }
  0x7f   :  { %671 = vmatprep.mubr.f32.mxu1 %v2697_v0 }
  0x80   :  { %2018 = vmatpush1.bf16.msra.mxu0 %v2786_v61 }
  0x81   :  { %2050 = vmatpush1.bf16.msra.mxu1 %v2790_v62  ;;  %2020 = vmatprep.subr.bf16.mxu0 %v2792_v63 }
  0x82   :  { %2052 = vmatprep.subr.bf16.mxu1 %v2795_v4 }
  0x84   :  { %2022 = vmatpush1.bf16.msra.mxu0 %v2800_v10 }
  0x85   :  { %2054 = vmatpush1.bf16.msra.mxu1 %v2804_v12  ;;  %2024 = vmatprep.subr.bf16.mxu0 %v2806_v13 }
  0x86   :  { %2056 = vmatprep.subr.bf16.mxu1 %v2809_v17 }
  0x88   :  { %2026 = vmatpush1.bf16.msra.mxu0 %v2813_v23 }
  0x89   :  { %2058 = vmatpush1.bf16.msra.mxu1 %v2818_v24  ;;  %2028 = vmatprep.subr.bf16.mxu0 %v2820_v25 }
  0x8a   :  { %2060 = vmatprep.subr.bf16.mxu1 %v2823_v29 }
  0x8c   :  { %2030 = vmatpush1.bf16.msra.mxu0 %v2826_v35 }
  0x8d   :  { %2062 = vmatpush1.bf16.msra.mxu1 %v2830_v36  ;;  %2032 = vmatprep.subr.bf16.mxu0 %v2832_v37 }
  0x8e   :  { %2064 = vmatprep.subr.bf16.mxu1 %v2835_v43 }
  0x90   :  { %2034 = vmatpush1.bf16.msra.mxu0 %v2838_v52 }
  0x91   :  { %2066 = vmatpush1.bf16.msra.mxu1 %v2842_v53  ;;  %2036 = vmatprep.subr.bf16.mxu0 %v2844_v54 }
  0x92   :  { %2068 = vmatprep.subr.bf16.mxu1 %v2847_v59 }
  0x94   :  { %2038 = vmatpush1.bf16.msra.mxu0 %v2850_v6 }
  0x95   :  { %2070 = vmatpush1.bf16.msra.mxu1 %v2854_v7  ;;  %2040 = vmatprep.subr.bf16.mxu0 %v2856_v8 }
  0x96   :  { %2072 = vmatprep.subr.bf16.mxu1 %v2859_v14 }
  0x98   :  { %2042 = vmatpush1.bf16.msra.mxu0 %v2862_v18 }
  0x99   :  { %2074 = vmatpush1.bf16.msra.mxu1 %v2866_v19  ;;  %2076 = vmatprep.subr.bf16.mxu0 %v2771_v38 }
  0x9a   :  { %2108 = vmatprep.subr.bf16.mxu1 %v2773_v42 }
 0x12e   :  { %v213_v22 = vpop.f32.mrb[0].mxu0 }
 0x12f   :  { %v215_v26 = vpop.f32.mrb[1].mxu0  ;;  %v290_v27 = vpop.f32.mrb[0].mxu1  ;;  %v2920_v1 = vadd.f32 %v213_v22, %v130_v39 }
 0x130   :  { %v292_v30 = vpop.f32.mrb[1].mxu1  ;;  %v2922_v2 = vadd.f32 %v215_v26, %v134_v40  ;;  %v2929_v22 = vadd.f32 %v290_v27, %v138_v41 }
 0x131   :  { %v2926_v28 = vadd.f32 %v292_v30, %v142_v45 }
 0x132   :  { %v219_v44 = vpop.f32.mrb[2].mxu0 }
 0x133   :  { %v2912_v46 = vadd.f32 %v219_v44, %v130_v39  ;;  %v221_v47 = vpop.f32.mrb[3].mxu0  ;;  %v296_v48 = vpop.f32.mrb[2].mxu1 }
 0x134   :  { %v2914_v56 = vadd.f32 %v221_v47, %v134_v40  ;;  %v2916_v57 = vadd.f32 %v296_v48, %v138_v41  ;;  %v298_v58 = vpop.f32.mrb[3].mxu1 }
 0x135   :  { %v2918_v60 = vadd.f32 %v298_v58, %v142_v45 }
 0x14e   :  { %v431_v3 = vpop.f32.mrb[4].mxu0 }
 0x14f   :  { %v507_v5 = vadd.f32 %v431_v3, %v2920_v1  ;;  %v502_v9 = vpop.f32.mrb[4].mxu1  ;;  %v433_v11 = vpop.f32.mrb[5].mxu0 }
 0x150   :  { %v508_v15 = vadd.f32 %v433_v11, %v2922_v2  ;;  %v504_v16 = vpop.f32.mrb[5].mxu1  ;;  %v509_v32 = vadd.f32 %v502_v9, %v2929_v22 }
 0x151   :  { %v1859_v20 = vmul.f32 -1.442695, %v507_v5  ;;  %v510_v31 = vadd.f32 %v504_v16, %v2926_v28 }
 0x152   :  { %v1860_v21 = vmul.f32 -1.442695, %v508_v15 }
 0x153   :  { %2468 = vpow2.f32 %v1859_v20  ;;  %v1861_v26 = vmul.f32 -1.442695, %v510_v31 }
 0x154   :  { %2470 = vpow2.f32 %v1860_v21 }
 0x155   :  { %2472 = vpow2.f32 %v1861_v26 }
 0x156   :  { %2474 = vtanh.f32 %v509_v32 }
 0x15d   :  { %v2469_v33 = vpop.eup %2468 }
 0x15e   :  { %v2471_v34 = vpop.eup %2470  ;;  %v514_v39 = vadd.f32 1.0, %v2469_v33 }
 0x15f   :  { %v520_v40 = vadd.f32 1.0, %v2471_v34  ;;  %v2473_v44 = vpop.eup %2472 }
 0x160   :  { %2476 = vrcp.f32 %v514_v39  ;;  %v2475_v47 = vpop.eup %2474  ;;  %v527_v58 = vadd.f32 1.0, %v2473_v44 }
 0x161   :  { %2478 = vrcp.f32 %v520_v40 }
 0x162   :  { %2480 = vrcp.f32 %v527_v58 }
 0x16a   :  { %v2477_v30 = vpop.eup %2476 }
 0x16b   :  { %v2479_v45 = vpop.eup %2478  ;;  %v531_v48 = vmul.f32 %v2477_v30, %v2475_v47 }
 0x16c   :  { %v530_v3 = vmul.f32 0.0, %v2479_v45  ;;  %v2481_v41 = vpop.eup %2480 }
 0x16e   :  { %v2932_v27 = vadd.f32 %v531_v48, %v530_v3 }
 0x170   :  { %2482 = vtanh.f32 %v2932_v27 }
 0x17a   :  { %v2483_v5 = vpop.eup %2482 }
 0x17b   :  { %v534_v9 = vmul.f32 %v2483_v5, %v2481_v41 }
 0x17d   :  { %535 = vst [vmem:[#allocation8] sm:$0x3] %v534_v9  ;;  %601 = vmatmul.mubr.f32.vlgmr.msra.gmra.mrb[6].mxu0 %v534_v9  ;;  %672 = vmatmul.mubr.f32.vlgmr.msra.gmra.mrb[6].mxu1 %v534_v9 }
 0x17e   :  { %2078 = vmatpush1.bf16.msra.mxu0 %v2775_v49  ;;  %2110 = vmatpush1.bf16.msra.mxu1 %v2778_v50 }
 0x17f   :  { %2080 = vmatprep.subr.bf16.mxu0 %v2780_v51  ;;  %2112 = vmatprep.subr.bf16.mxu1 %v2783_v55 }
 0x180   :  { %789 = vmatprep.mubr.f32.mxu0 %v2697_v0  ;;  %860 = vmatprep.mubr.f32.mxu1 %v2697_v0 }
 0x182   :  { %2082 = vmatpush1.bf16.msra.mxu0 %v2786_v61  ;;  %2114 = vmatpush1.bf16.msra.mxu1 %v2790_v62 }
 0x183   :  { %2084 = vmatprep.subr.bf16.mxu0 %v2792_v63  ;;  %2116 = vmatprep.subr.bf16.mxu1 %v2795_v4 }
 0x186   :  { %2086 = vmatpush1.bf16.msra.mxu0 %v2800_v10  ;;  %2118 = vmatpush1.bf16.msra.mxu1 %v2804_v12 }
 0x187   :  { %2088 = vmatprep.subr.bf16.mxu0 %v2806_v13  ;;  %2120 = vmatprep.subr.bf16.mxu1 %v2809_v17 }
 0x18a   :  { %2090 = vmatpush1.bf16.msra.mxu0 %v2813_v23  ;;  %2122 = vmatpush1.bf16.msra.mxu1 %v2818_v24 }
 0x18b   :  { %2092 = vmatprep.subr.bf16.mxu0 %v2820_v25  ;;  %2124 = vmatprep.subr.bf16.mxu1 %v2823_v29 }
 0x18e   :  { %2094 = vmatpush1.bf16.msra.mxu0 %v2826_v35  ;;  %2126 = vmatpush1.bf16.msra.mxu1 %v2830_v36 }
 0x18f   :  { %2096 = vmatprep.subr.bf16.mxu0 %v2832_v37  ;;  %2128 = vmatprep.subr.bf16.mxu1 %v2835_v43 }
 0x192   :  { %2098 = vmatpush1.bf16.msra.mxu0 %v2838_v52  ;;  %2130 = vmatpush1.bf16.msra.mxu1 %v2842_v53 }
 0x193   :  { %2100 = vmatprep.subr.bf16.mxu0 %v2844_v54  ;;  %2132 = vmatprep.subr.bf16.mxu1 %v2847_v59 }
 0x196   :  { %2102 = vmatpush1.bf16.msra.mxu0 %v2850_v6  ;;  %2134 = vmatpush1.bf16.msra.mxu1 %v2854_v7 }
 0x197   :  { %2104 = vmatprep.subr.bf16.mxu0 %v2856_v8  ;;  %2136 = vmatprep.subr.bf16.mxu1 %v2859_v14 }
 0x19a   :  { %2106 = vmatpush1.bf16.msra.mxu0 %v2862_v18  ;;  %2138 = vmatpush1.bf16.msra.mxu1 %v2866_v19 }
 0x19b   :  { %2140 = vmatprep.subr.bf16.mxu0 %v2771_v38  ;;  %2172 = vmatprep.subr.bf16.mxu1 %v2773_v42 }
 0x250   :  { %v602_v11 = vpop.f32.mrb[6].mxu0  ;;  %v673_v15 = vpop.f32.mrb[6].mxu1 }
 0x251   :  { %v682_v16 = vrot.slane %v602_v11, 6  ;;  %v604_v20 = vpop.f32.mrb[7].mxu0  ;;  %v675_v21 = vpop.f32.mrb[7].mxu1  ;;  %v684_v44 = vrot.slane %v673_v15, 6  ;;  %v714_v11 = vrot.slane %v2932_v27, 6 }
 0x252   :  { %v683_v31 = vrot.slane %v604_v20, 6  ;;  %v685_v39 = vrot.slane %v675_v21, 6 }
 0x253   :  { %v690_v26 = vadd.f32 %v682_v16, %v2920_v1  ;;  %v692_v30 = vadd.f32 %v684_v44, %v2929_v22 }
 0x254   :  { %v691_v32 = vadd.f32 %v683_v31, %v2922_v2  ;;  %v693_v40 = vadd.f32 %v685_v39, %v2926_v28 }
 0x255   :  { %v1862_v33 = vmul.f32 -1.442695, %v690_v26 }
 0x256   :  { %v1863_v34 = vmul.f32 -1.442695, %v691_v32  ;;  %v1864_v47 = vmul.f32 -1.442695, %v693_v40 }
 0x257   :  { %2484 = vpow2.f32 %v1862_v33 }
 0x258   :  { %2486 = vpow2.f32 %v1863_v34 }
 0x259   :  { %2488 = vpow2.f32 %v1864_v47 }
 0x25a   :  { %2490 = vtanh.f32 %v692_v30 }
 0x261   :  { %v2485_v45 = vpop.eup %2484 }
 0x262   :  { %v2487_v48 = vpop.eup %2486  ;;  %v697_v58 = vadd.f32 1.0, %v2485_v45 }
 0x263   :  { %v703_v3 = vadd.f32 1.0, %v2487_v48  ;;  %v2489_v41 = vpop.eup %2488 }
 0x264   :  { %2492 = vrcp.f32 %v697_v58  ;;  %v2491_v5 = vpop.eup %2490  ;;  %v710_v21 = vadd.f32 1.0, %v2489_v41 }
 0x265   :  { %2494 = vrcp.f32 %v703_v3 }
 0x266   :  { %2496 = vrcp.f32 %v710_v21 }
 0x26e   :  { %v2493_v9 = vpop.eup %2492 }
 0x26f   :  { %v2495_v16 = vpop.eup %2494  ;;  %v717_v20 = vmul.f32 %v2493_v9, %v2491_v5 }
 0x270   :  { %v716_v15 = vmul.f32 %v2495_v16, %v714_v11  ;;  %v2497_v26 = vpop.eup %2496 }
 0x272   :  { %v2974_v31 = vadd.f32 %v717_v20, %v716_v15 }
 0x274   :  { %2498 = vtanh.f32 %v2974_v31 }
 0x27e   :  { %v2499_v32 = vpop.eup %2498 }
 0x27f   :  { %v720_v33 = vmul.f32 %v2499_v32, %v2497_v26 }
 0x281   :  { %721 = vst [vmem:[#allocation8] sm:$0xc] %v720_v33  ;;  %v723_v34 = vrot.slane %v720_v33, 2 }
 0x283   :  { %790 = vmatmul.mubr.f32.vlgmr.msra.gmra.mrb[8].mxu0 %v723_v34  ;;  %861 = vmatmul.mubr.f32.vlgmr.msra.gmra.mrb[8].mxu1 %v723_v34 }
 0x284   :  { %2142 = vmatpush1.bf16.msra.mxu0 %v2775_v49  ;;  %2174 = vmatpush1.bf16.msra.mxu1 %v2778_v50 }
 0x285   :  { %2144 = vmatprep.subr.bf16.mxu0 %v2780_v51  ;;  %2176 = vmatprep.subr.bf16.mxu1 %v2783_v55 }
 0x286   :  { %978 = vmatprep.mubr.f32.mxu0 %v2697_v0  ;;  %1049 = vmatprep.mubr.f32.mxu1 %v2697_v0 }
 0x288   :  { %2146 = vmatpush1.bf16.msra.mxu0 %v2786_v61  ;;  %2178 = vmatpush1.bf16.msra.mxu1 %v2790_v62 }
 0x289   :  { %2148 = vmatprep.subr.bf16.mxu0 %v2792_v63  ;;  %2180 = vmatprep.subr.bf16.mxu1 %v2795_v4 }
 0x28c   :  { %2150 = vmatpush1.bf16.msra.mxu0 %v2800_v10  ;;  %2182 = vmatpush1.bf16.msra.mxu1 %v2804_v12 }
 0x28d   :  { %2152 = vmatprep.subr.bf16.mxu0 %v2806_v13  ;;  %2184 = vmatprep.subr.bf16.mxu1 %v2809_v17 }
 0x290   :  { %2154 = vmatpush1.bf16.msra.mxu0 %v2813_v23  ;;  %2186 = vmatpush1.bf16.msra.mxu1 %v2818_v24 }
 0x291   :  { %2156 = vmatprep.subr.bf16.mxu0 %v2820_v25  ;;  %2188 = vmatprep.subr.bf16.mxu1 %v2823_v29 }
 0x294   :  { %2158 = vmatpush1.bf16.msra.mxu0 %v2826_v35  ;;  %2190 = vmatpush1.bf16.msra.mxu1 %v2830_v36 }
 0x295   :  { %2160 = vmatprep.subr.bf16.mxu0 %v2832_v37  ;;  %2192 = vmatprep.subr.bf16.mxu1 %v2835_v43 }
 0x298   :  { %2162 = vmatpush1.bf16.msra.mxu0 %v2838_v52  ;;  %2194 = vmatpush1.bf16.msra.mxu1 %v2842_v53 }
 0x299   :  { %2164 = vmatprep.subr.bf16.mxu0 %v2844_v54  ;;  %2196 = vmatprep.subr.bf16.mxu1 %v2847_v59 }
 0x29c   :  { %2166 = vmatpush1.bf16.msra.mxu0 %v2850_v6  ;;  %2198 = vmatpush1.bf16.msra.mxu1 %v2854_v7 }
 0x29d   :  { %2168 = vmatprep.subr.bf16.mxu0 %v2856_v8  ;;  %2200 = vmatprep.subr.bf16.mxu1 %v2859_v14 }
 0x2a0   :  { %2170 = vmatpush1.bf16.msra.mxu0 %v2862_v18  ;;  %2202 = vmatpush1.bf16.msra.mxu1 %v2866_v19 }
 0x2a1   :  { %2204 = vmatprep.subr.bf16.mxu0 %v2771_v38  ;;  %2236 = vmatprep.subr.bf16.mxu1 %v2773_v42 }
 0x356   :  { %v791_v27 = vpop.f32.mrb[8].mxu0  ;;  %v862_v39 = vpop.f32.mrb[8].mxu1 }
 0x357   :  { %v871_v40 = vrot.slane %v791_v27, 4  ;;  %v793_v44 = vpop.f32.mrb[9].mxu0  ;;  %v864_v47 = vpop.f32.mrb[9].mxu1  ;;  %v873_v9 = vrot.slane %v862_v39, 4  ;;  %v903_v27 = vrot.slane %v2974_v31, 6 }
 0x358   :  { %v872_v30 = vrot.slane %v793_v44, 4  ;;  %v874_v41 = vrot.slane %v864_v47, 4 }
 0x359   :  { %v879_v45 = vadd.f32 %v871_v40, %v2920_v1  ;;  %v881_v16 = vadd.f32 %v873_v9, %v2929_v22 }
 0x35a   :  { %v880_v48 = vadd.f32 %v872_v30, %v2922_v2  ;;  %v882_v5 = vadd.f32 %v874_v41, %v2926_v28 }
 0x35b   :  { %v1865_v58 = vmul.f32 -1.442695, %v879_v45 }
 0x35c   :  { %v1866_v3 = vmul.f32 -1.442695, %v880_v48  ;;  %v1867_v11 = vmul.f32 -1.442695, %v882_v5 }
 0x35d   :  { %2500 = vpow2.f32 %v1865_v58 }
 0x35e   :  { %2502 = vpow2.f32 %v1866_v3 }
 0x35f   :  { %2504 = vpow2.f32 %v1867_v11 }
 0x360   :  { %2506 = vtanh.f32 %v881_v16 }
 0x367   :  { %v2501_v20 = vpop.eup %2500 }
 0x368   :  { %v2503_v21 = vpop.eup %2502  ;;  %v886_v15 = vadd.f32 1.0, %v2501_v20 }
 0x369   :  { %v892_v26 = vadd.f32 1.0, %v2503_v21  ;;  %v2505_v32 = vpop.eup %2504 }
 0x36a   :  { %2508 = vrcp.f32 %v886_v15  ;;  %v2507_v33 = vpop.eup %2506  ;;  %v899_v47 = vadd.f32 1.0, %v2505_v32 }
 0x36b   :  { %2510 = vrcp.f32 %v892_v26 }
 0x36c   :  { %2512 = vrcp.f32 %v899_v47 }
 0x374   :  { %v2509_v34 = vpop.eup %2508 }
 0x375   :  { %v2511_v40 = vpop.eup %2510  ;;  %v906_v44 = vmul.f32 %v2509_v34, %v2507_v33 }
 0x376   :  { %v905_v39 = vmul.f32 %v2511_v40, %v903_v27  ;;  %v2513_v45 = vpop.eup %2512 }
 0x378   :  { %v3016_v30 = vadd.f32 %v906_v44, %v905_v39 }
 0x37a   :  { %2514 = vtanh.f32 %v3016_v30 }
 0x384   :  { %v2515_v48 = vpop.eup %2514 }
 0x385   :  { %v909_v58 = vmul.f32 %v2515_v48, %v2513_v45 }
 0x387   :  { %910 = vst [vmem:[#allocation8] sm:$0x30] %v909_v58  ;;  %v912_v3 = vrot.slane %v909_v58, 4  ;;  %v1092_v58 = vrot.slane %v3016_v30, 6 }
 0x389   :  { %979 = vmatmul.mubr.f32.vlgmr.msra.gmra.mrb[10].mxu0 %v912_v3  ;;  %1050 = vmatmul.mubr.f32.vlgmr.msra.gmra.mrb[10].mxu1 %v912_v3 }
 0x38a   :  { %2206 = vmatpush1.bf16.msra.mxu0 %v2775_v49  ;;  %2238 = vmatpush1.bf16.msra.mxu1 %v2778_v50 }
 0x38b   :  { %2208 = vmatprep.subr.bf16.mxu0 %v2780_v51  ;;  %2240 = vmatprep.subr.bf16.mxu1 %v2783_v55 }
 0x38c   :  { %1167 = vmatprep.mubr.f32.mxu0 %v2697_v0  ;;  %1238 = vmatprep.mubr.f32.mxu1 %v2697_v0 }
 0x38e   :  { %2210 = vmatpush1.bf16.msra.mxu0 %v2786_v61  ;;  %2242 = vmatpush1.bf16.msra.mxu1 %v2790_v62 }
 0x38f   :  { %2212 = vmatprep.subr.bf16.mxu0 %v2792_v63  ;;  %2244 = vmatprep.subr.bf16.mxu1 %v2795_v4 }
 0x392   :  { %2214 = vmatpush1.bf16.msra.mxu0 %v2800_v10  ;;  %2246 = vmatpush1.bf16.msra.mxu1 %v2804_v12 }
 0x393   :  { %2216 = vmatprep.subr.bf16.mxu0 %v2806_v13  ;;  %2248 = vmatprep.subr.bf16.mxu1 %v2809_v17 }
 0x396   :  { %2218 = vmatpush1.bf16.msra.mxu0 %v2813_v23  ;;  %2250 = vmatpush1.bf16.msra.mxu1 %v2818_v24 }
 0x397   :  { %2220 = vmatprep.subr.bf16.mxu0 %v2820_v25  ;;  %2252 = vmatprep.subr.bf16.mxu1 %v2823_v29 }
 0x39a   :  { %2222 = vmatpush1.bf16.msra.mxu0 %v2826_v35  ;;  %2254 = vmatpush1.bf16.msra.mxu1 %v2830_v36 }
 0x39b   :  { %2224 = vmatprep.subr.bf16.mxu0 %v2832_v37  ;;  %2256 = vmatprep.subr.bf16.mxu1 %v2835_v43 }
 0x39e   :  { %2226 = vmatpush1.bf16.msra.mxu0 %v2838_v52  ;;  %2258 = vmatpush1.bf16.msra.mxu1 %v2842_v53 }
 0x39f   :  { %2228 = vmatprep.subr.bf16.mxu0 %v2844_v54  ;;  %2260 = vmatprep.subr.bf16.mxu1 %v2847_v59 }
 0x3a2   :  { %2230 = vmatpush1.bf16.msra.mxu0 %v2850_v6  ;;  %2262 = vmatpush1.bf16.msra.mxu1 %v2854_v7 }
 0x3a3   :  { %2232 = vmatprep.subr.bf16.mxu0 %v2856_v8  ;;  %2264 = vmatprep.subr.bf16.mxu1 %v2859_v14 }
 0x3a6   :  { %2234 = vmatpush1.bf16.msra.mxu0 %v2862_v18  ;;  %2266 = vmatpush1.bf16.msra.mxu1 %v2866_v19 }
 0x3a7   :  { %2268 = vmatprep.subr.bf16.mxu0 %v2771_v38  ;;  %2300 = vmatprep.subr.bf16.mxu1 %v2773_v42 }
 0x45c   :  { %v980_v31 = vpop.f32.mrb[10].mxu0  ;;  %v1051_v41 = vpop.f32.mrb[10].mxu1 }
 0x45d   :  { %v1060_v5 = vrot.slane %v980_v31, 2  ;;  %v982_v9 = vpop.f32.mrb[11].mxu0  ;;  %v1053_v11 = vpop.f32.mrb[11].mxu1  ;;  %v1062_v34 = vrot.slane %v1051_v41, 2 }
 0x45e   :  { %v1061_v16 = vrot.slane %v982_v9, 2  ;;  %v1063_v32 = vrot.slane %v1053_v11, 2 }
 0x45f   :  { %v1068_v20 = vadd.f32 %v1060_v5, %v2920_v1  ;;  %v1070_v40 = vadd.f32 %v1062_v34, %v2929_v22 }
 0x460   :  { %v1069_v21 = vadd.f32 %v1061_v16, %v2922_v2  ;;  %v1071_v33 = vadd.f32 %v1063_v32, %v2926_v28 }
 0x461   :  { %v1868_v15 = vmul.f32 -1.442695, %v1068_v20 }
 0x462   :  { %v1869_v26 = vmul.f32 -1.442695, %v1069_v21  ;;  %v1870_v27 = vmul.f32 -1.442695, %v1071_v33 }
 0x463   :  { %2516 = vpow2.f32 %v1868_v15 }
 0x464   :  { %2518 = vpow2.f32 %v1869_v26 }
 0x465   :  { %2520 = vpow2.f32 %v1870_v27 }
 0x466   :  { %2522 = vtanh.f32 %v1070_v40 }
 0x46d   :  { %v2517_v44 = vpop.eup %2516 }
 0x46e   :  { %v2519_v47 = vpop.eup %2518  ;;  %v1075_v39 = vadd.f32 1.0, %v2517_v44 }
 0x46f   :  { %v1081_v45 = vadd.f32 1.0, %v2519_v47  ;;  %v2521_v1 = vpop.eup %2520 }
 0x470   :  { %2524 = vrcp.f32 %v1075_v39  ;;  %v2523_v2 = vpop.eup %2522  ;;  %v1088_v28 = vadd.f32 1.0, %v2521_v1 }
 0x471   :  { %2526 = vrcp.f32 %v1081_v45 }
 0x472   :  { %2528 = vrcp.f32 %v1088_v28 }
 0x47a   :  { %v2525_v48 = vpop.eup %2524 }
 0x47b   :  { %v2527_v3 = vpop.eup %2526  ;;  %v1095_v31 = vmul.f32 %v2525_v48, %v2523_v2 }
 0x47c   :  { %v1094_v41 = vmul.f32 %v2527_v3, %v1092_v58  ;;  %v2529_v22 = vpop.eup %2528 }
 0x47e   :  { %v3058_v5 = vadd.f32 %v1095_v31, %v1094_v41 }
 0x480   :  { %2530 = vtanh.f32 %v3058_v5  ;;  %v1269_v3 = vrot.slane %v3058_v5, 6 }
 0x48a   :  { %v2531_v9 = vpop.eup %2530 }
 0x48b   :  { %v1098_v11 = vmul.f32 %v2531_v9, %v2529_v22 }
 0x48d   :  { %1099 = vst [vmem:[#allocation8] sm:$0xc0] %v1098_v11  ;;  %v1101_v16 = vrot.slane %v1098_v11, 6 }
 0x48f   :  { %1168 = vmatmul.mubr.f32.vlgmr.msra.gmra.mrb[12].mxu0 %v1101_v16  ;;  %1239 = vmatmul.mubr.f32.vlgmr.msra.gmra.mrb[12].mxu1 %v1101_v16 }
 0x490   :  { %2270 = vmatpush1.bf16.msra.mxu0 %v2775_v49  ;;  %2302 = vmatpush1.bf16.msra.mxu1 %v2778_v50 }
 0x491   :  { %2272 = vmatprep.subr.bf16.mxu0 %v2780_v51  ;;  %2304 = vmatprep.subr.bf16.mxu1 %v2783_v55 }
 0x492   :  { %1341 = vmatprep.mubr.f32.mxu0 %v2697_v0  ;;  %1412 = vmatprep.mubr.f32.mxu1 %v2697_v0 }
 0x494   :  { %2274 = vmatpush1.bf16.msra.mxu0 %v2786_v61  ;;  %2306 = vmatpush1.bf16.msra.mxu1 %v2790_v62 }
 0x495   :  { %2276 = vmatprep.subr.bf16.mxu0 %v2792_v63  ;;  %2308 = vmatprep.subr.bf16.mxu1 %v2795_v4 }
 0x498   :  { %2278 = vmatpush1.bf16.msra.mxu0 %v2800_v10  ;;  %2310 = vmatpush1.bf16.msra.mxu1 %v2804_v12 }
 0x499   :  { %2280 = vmatprep.subr.bf16.mxu0 %v2806_v13  ;;  %2312 = vmatprep.subr.bf16.mxu1 %v2809_v17 }
 0x49c   :  { %2282 = vmatpush1.bf16.msra.mxu0 %v2813_v23  ;;  %2314 = vmatpush1.bf16.msra.mxu1 %v2818_v24 }
 0x49d   :  { %2284 = vmatprep.subr.bf16.mxu0 %v2820_v25  ;;  %2316 = vmatprep.subr.bf16.mxu1 %v2823_v29 }
 0x4a0   :  { %2286 = vmatpush1.bf16.msra.mxu0 %v2826_v35  ;;  %2318 = vmatpush1.bf16.msra.mxu1 %v2830_v36 }
 0x4a1   :  { %2288 = vmatprep.subr.bf16.mxu0 %v2832_v37  ;;  %2320 = vmatprep.subr.bf16.mxu1 %v2835_v43 }
 0x4a4   :  { %2290 = vmatpush1.bf16.msra.mxu0 %v2838_v52  ;;  %2322 = vmatpush1.bf16.msra.mxu1 %v2842_v53 }
 0x4a5   :  { %2292 = vmatprep.subr.bf16.mxu0 %v2844_v54  ;;  %2324 = vmatprep.subr.bf16.mxu1 %v2847_v59 }
 0x4a8   :  { %2294 = vmatpush1.bf16.msra.mxu0 %v2850_v6  ;;  %2326 = vmatpush1.bf16.msra.mxu1 %v2854_v7 }
 0x4a9   :  { %2296 = vmatprep.subr.bf16.mxu0 %v2856_v8  ;;  %2328 = vmatprep.subr.bf16.mxu1 %v2859_v14 }
 0x4ac   :  { %2298 = vmatpush1.bf16.msra.mxu0 %v2862_v18  ;;  %2330 = vmatpush1.bf16.msra.mxu1 %v2866_v19 }
 0x4ad   :  { %2332 = vmatprep.subr.bf16.mxu0 %v2771_v38  ;;  %2364 = vmatprep.subr.bf16.mxu1 %v2773_v42 }
 0x562   :  { %v1169_v30 = vpop.f32.mrb[12].mxu0  ;;  %v1240_v20 = vpop.f32.mrb[12].mxu1 }
 0x563   :  { %v1245_v21 = vadd.f32 %v1169_v30, %v2912_v46  ;;  %v1171_v15 = vpop.f32.mrb[13].mxu0  ;;  %v1242_v26 = vpop.f32.mrb[13].mxu1  ;;  %v1247_v44 = vadd.f32 %v1240_v20, %v2916_v57 }
 0x564   :  { %v1246_v32 = vadd.f32 %v1171_v15, %v2914_v56  ;;  %v1248_v27 = vadd.f32 %v1242_v26, %v2918_v60 }
 0x565   :  { %v1871_v33 = vmul.f32 -1.442695, %v1245_v21 }
 0x566   :  { %v1872_v34 = vmul.f32 -1.442695, %v1246_v32  ;;  %v1873_v40 = vmul.f32 -1.442695, %v1248_v27 }
 0x567   :  { %2532 = vpow2.f32 %v1871_v33 }
 0x568   :  { %2534 = vpow2.f32 %v1872_v34 }
 0x569   :  { %2536 = vpow2.f32 %v1873_v40 }
 0x56a   :  { %2538 = vtanh.f32 %v1247_v44 }
 0x571   :  { %v2533_v47 = vpop.eup %2532 }
 0x572   :  { %v2535_v39 = vpop.eup %2534  ;;  %v1252_v45 = vadd.f32 1.0, %v2533_v47 }
 0x573   :  { %v1258_v1 = vadd.f32 1.0, %v2535_v39  ;;  %v2537_v2 = vpop.eup %2536 }
 0x574   :  { %2540 = vrcp.f32 %v1252_v45  ;;  %v2539_v48 = vpop.eup %2538  ;;  %v1265_v41 = vadd.f32 1.0, %v2537_v2 }
 0x575   :  { %2542 = vrcp.f32 %v1258_v1 }
 0x576   :  { %2544 = vrcp.f32 %v1265_v41 }
 0x57e   :  { %v2541_v58 = vpop.eup %2540 }
 0x57f   :  { %v2543_v31 = vpop.eup %2542  ;;  %v1272_v28 = vmul.f32 %v2541_v58, %v2539_v48 }
 0x580   :  { %v1271_v22 = vmul.f32 %v2543_v31, %v1269_v3  ;;  %v2545_v11 = vpop.eup %2544 }
 0x582   :  { %v3100_v9 = vadd.f32 %v1272_v28, %v1271_v22 }
 0x584   :  { %2546 = vtanh.f32 %v3100_v9  ;;  %v1455_v28 = vrot.slane %v3100_v9, 6 }
 0x58e   :  { %v2547_v16 = vpop.eup %2546 }
 0x58f   :  { %v1275_v30 = vmul.f32 %v2547_v16, %v2545_v11 }
 0x591   :  { %1276 = vst [vmem:[#allocation8 + $0x8] sm:$0x3] %v1275_v30  ;;  %1342 = vmatmul.mubr.f32.vlgmr.msra.gmra.mrb[14].mxu0 %v1275_v30  ;;  %1413 = vmatmul.mubr.f32.vlgmr.msra.gmra.mrb[14].mxu1 %v1275_v30 }
 0x592   :  { %2334 = vmatpush1.bf16.msra.mxu0 %v2775_v49  ;;  %2366 = vmatpush1.bf16.msra.mxu1 %v2778_v50 }
 0x593   :  { %2336 = vmatprep.subr.bf16.mxu0 %v2780_v51  ;;  %2368 = vmatprep.subr.bf16.mxu1 %v2783_v55 }
 0x594   :  { %1530 = vmatprep.mubr.f32.mxu0 %v2697_v0  ;;  %1601 = vmatprep.mubr.f32.mxu1 %v2697_v0 }
 0x596   :  { %2338 = vmatpush1.bf16.msra.mxu0 %v2786_v61  ;;  %2370 = vmatpush1.bf16.msra.mxu1 %v2790_v62 }
 0x597   :  { %2340 = vmatprep.subr.bf16.mxu0 %v2792_v63  ;;  %2372 = vmatprep.subr.bf16.mxu1 %v2795_v4 }
 0x59a   :  { %2342 = vmatpush1.bf16.msra.mxu0 %v2800_v10  ;;  %2374 = vmatpush1.bf16.msra.mxu1 %v2804_v12 }
 0x59b   :  { %2344 = vmatprep.subr.bf16.mxu0 %v2806_v13  ;;  %2376 = vmatprep.subr.bf16.mxu1 %v2809_v17 }
 0x59e   :  { %2346 = vmatpush1.bf16.msra.mxu0 %v2813_v23  ;;  %2378 = vmatpush1.bf16.msra.mxu1 %v2818_v24 }
 0x59f   :  { %2348 = vmatprep.subr.bf16.mxu0 %v2820_v25  ;;  %2380 = vmatprep.subr.bf16.mxu1 %v2823_v29 }
 0x5a2   :  { %2350 = vmatpush1.bf16.msra.mxu0 %v2826_v35  ;;  %2382 = vmatpush1.bf16.msra.mxu1 %v2830_v36 }
 0x5a3   :  { %2352 = vmatprep.subr.bf16.mxu0 %v2832_v37  ;;  %2384 = vmatprep.subr.bf16.mxu1 %v2835_v43 }
 0x5a6   :  { %2354 = vmatpush1.bf16.msra.mxu0 %v2838_v52  ;;  %2386 = vmatpush1.bf16.msra.mxu1 %v2842_v53 }
 0x5a7   :  { %2356 = vmatprep.subr.bf16.mxu0 %v2844_v54  ;;  %2388 = vmatprep.subr.bf16.mxu1 %v2847_v59 }
 0x5aa   :  { %2358 = vmatpush1.bf16.msra.mxu0 %v2850_v6  ;;  %2390 = vmatpush1.bf16.msra.mxu1 %v2854_v7 }
 0x5ab   :  { %2360 = vmatprep.subr.bf16.mxu0 %v2856_v8  ;;  %2392 = vmatprep.subr.bf16.mxu1 %v2859_v14 }
 0x5ae   :  { %2362 = vmatpush1.bf16.msra.mxu0 %v2862_v18  ;;  %2394 = vmatpush1.bf16.msra.mxu1 %v2866_v19 }
 0x5af   :  { %2396 = vmatprep.subr.bf16.mxu0 %v2771_v38  ;;  %2428 = vmatprep.subr.bf16.mxu1 %v2773_v42 }
 0x664   :  { %v1343_v5 = vpop.f32.mrb[14].mxu0  ;;  %v1414_v20 = vpop.f32.mrb[14].mxu1 }
 0x665   :  { %v1423_v21 = vrot.slane %v1343_v5, 6  ;;  %v1345_v15 = vpop.f32.mrb[15].mxu0  ;;  %v1416_v26 = vpop.f32.mrb[15].mxu1  ;;  %v1425_v38 = vrot.slane %v1414_v20, 6 }
 0x666   :  { %v1424_v32 = vrot.slane %v1345_v15, 6  ;;  %v1426_v44 = vrot.slane %v1416_v26, 6 }
 0x667   :  { %v1431_v33 = vadd.f32 %v1423_v21, %v2912_v46  ;;  %v1433_v42 = vadd.f32 %v1425_v38, %v2916_v57 }
 0x668   :  { %v1432_v34 = vadd.f32 %v1424_v32, %v2914_v56  ;;  %v1434_v47 = vadd.f32 %v1426_v44, %v2918_v60 }
 0x669   :  { %v1874_v27 = vmul.f32 -1.442695, %v1431_v33 }
 0x66a   :  { %v1875_v40 = vmul.f32 -1.442695, %v1432_v34  ;;  %v1876_v39 = vmul.f32 -1.442695, %v1434_v47 }
 0x66b   :  { %2548 = vpow2.f32 %v1874_v27 }
 0x66c   :  { %2550 = vpow2.f32 %v1875_v40 }
 0x66d   :  { %2552 = vpow2.f32 %v1876_v39 }
 0x66e   :  { %2554 = vtanh.f32 %v1433_v42 }
 0x675   :  { %v2549_v45 = vpop.eup %2548 }
 0x676   :  { %v2551_v1 = vpop.eup %2550  ;;  %v1438_v2 = vadd.f32 1.0, %v2549_v45 }
 0x677   :  { %v1444_v48 = vadd.f32 1.0, %v2551_v1  ;;  %v2553_v58 = vpop.eup %2552 }
 0x678   :  { %2556 = vrcp.f32 %v1438_v2  ;;  %v2555_v3 = vpop.eup %2554  ;;  %v1451_v11 = vadd.f32 1.0, %v2553_v58 }
 0x679   :  { %2558 = vrcp.f32 %v1444_v48 }
 0x67a   :  { %2560 = vrcp.f32 %v1451_v11 }
 0x682   :  { %v2557_v31 = vpop.eup %2556 }
 0x683   :  { %v2559_v41 = vpop.eup %2558  ;;  %v1458_v22 = vmul.f32 %v2557_v31, %v2555_v3 }
 0x684   :  { %v1457_v16 = vmul.f32 %v2559_v41, %v1455_v28  ;;  %v2561_v5 = vpop.eup %2560 }
 0x686   :  { %v3142_v30 = vadd.f32 %v1458_v22, %v1457_v16 }
 0x688   :  { %2562 = vtanh.f32 %v3142_v30 }
 0x692   :  { %v2563_v20 = vpop.eup %2562 }
 0x693   :  { %v1461_v21 = vmul.f32 %v2563_v20, %v2561_v5 }
 0x695   :  { %1462 = vst [vmem:[#allocation8 + $0x8] sm:$0xc] %v1461_v21  ;;  %v1464_v15 = vrot.slane %v1461_v21, 2 }
 0x697   :  { %1531 = vmatmul.mubr.f32.vlgmr.msra.gmra.mrb[16].mxu0 %v1464_v15  ;;  %1602 = vmatmul.mubr.f32.vlgmr.msra.gmra.mrb[16].mxu1 %v1464_v15 }
 0x698   :  { %2398 = vmatpush1.bf16.msra.mxu0 %v2775_v49  ;;  %2430 = vmatpush1.bf16.msra.mxu1 %v2778_v50 }
 0x699   :  { %2400 = vmatprep.subr.bf16.mxu0 %v2780_v51  ;;  %2432 = vmatprep.subr.bf16.mxu1 %v2783_v55 }
 0x69a   :  { %1719 = vmatprep.mubr.f32.mxu0 %v2697_v0  ;;  %1790 = vmatprep.mubr.f32.mxu1 %v2697_v0 }
 0x69c   :  { %2402 = vmatpush1.bf16.msra.mxu0 %v2786_v61  ;;  %2434 = vmatpush1.bf16.msra.mxu1 %v2790_v62 }
 0x69d   :  { %2404 = vmatprep.subr.bf16.mxu0 %v2792_v63  ;;  %2436 = vmatprep.subr.bf16.mxu1 %v2795_v4 }
 0x6a0   :  { %2406 = vmatpush1.bf16.msra.mxu0 %v2800_v10  ;;  %2438 = vmatpush1.bf16.msra.mxu1 %v2804_v12 }
 0x6a1   :  { %2408 = vmatprep.subr.bf16.mxu0 %v2806_v13  ;;  %2440 = vmatprep.subr.bf16.mxu1 %v2809_v17 }
 0x6a4   :  { %2410 = vmatpush1.bf16.msra.mxu0 %v2813_v23  ;;  %2442 = vmatpush1.bf16.msra.mxu1 %v2818_v24 }
 0x6a5   :  { %2412 = vmatprep.subr.bf16.mxu0 %v2820_v25  ;;  %2444 = vmatprep.subr.bf16.mxu1 %v2823_v29 }
 0x6a8   :  { %2414 = vmatpush1.bf16.msra.mxu0 %v2826_v35  ;;  %2446 = vmatpush1.bf16.msra.mxu1 %v2830_v36 }
 0x6a9   :  { %2416 = vmatprep.subr.bf16.mxu0 %v2832_v37  ;;  %2448 = vmatprep.subr.bf16.mxu1 %v2835_v43 }
 0x6ac   :  { %2418 = vmatpush1.bf16.msra.mxu0 %v2838_v52  ;;  %2450 = vmatpush1.bf16.msra.mxu1 %v2842_v53  ;;  %v1644_v53 = vrot.slane %v3142_v30, 6 }
 0x6ad   :  { %2420 = vmatprep.subr.bf16.mxu0 %v2844_v54  ;;  %2452 = vmatprep.subr.bf16.mxu1 %v2847_v59 }
 0x6b0   :  { %2422 = vmatpush1.bf16.msra.mxu0 %v2850_v6  ;;  %2454 = vmatpush1.bf16.msra.mxu1 %v2854_v7 }
 0x6b1   :  { %2424 = vmatprep.subr.bf16.mxu0 %v2856_v8  ;;  %2456 = vmatprep.subr.bf16.mxu1 %v2859_v14 }
 0x6b4   :  { %2426 = vmatpush1.bf16.msra.mxu0 %v2862_v18  ;;  %2458 = vmatpush1.bf16.msra.mxu1 %v2866_v19 }
 0x76a   :  { %v1532_v0 = vpop.f32.mrb[16].mxu0  ;;  %v1603_v49 = vpop.f32.mrb[16].mxu1 }
 0x76b   :  { %v1612_v50 = vrot.slane %v1532_v0, 4  ;;  %v1534_v51 = vpop.f32.mrb[17].mxu0  ;;  %v1605_v55 = vpop.f32.mrb[17].mxu1  ;;  %v1614_v17 = vrot.slane %v1603_v49, 4 }
 0x76c   :  { %v1613_v61 = vrot.slane %v1534_v51, 4  ;;  %v1615_v12 = vrot.slane %v1605_v55, 4 }
 0x76d   :  { %v1620_v62 = vadd.f32 %v1612_v50, %v2912_v46  ;;  %v1622_v24 = vadd.f32 %v1614_v17, %v2916_v57 }
 0x76e   :  { %v1621_v63 = vadd.f32 %v1613_v61, %v2914_v56  ;;  %v1623_v13 = vadd.f32 %v1615_v12, %v2918_v60 }
 0x76f   :  { %v1877_v4 = vmul.f32 -1.442695, %v1620_v62 }
 0x770   :  { %v1878_v10 = vmul.f32 -1.442695, %v1621_v63  ;;  %v1879_v23 = vmul.f32 -1.442695, %v1623_v13 }
 0x771   :  { %2564 = vpow2.f32 %v1877_v4 }
 0x772   :  { %2566 = vpow2.f32 %v1878_v10 }
 0x773   :  { %2568 = vpow2.f32 %v1879_v23 }
 0x774   :  { %2570 = vtanh.f32 %v1622_v24 }
 0x77b   :  { %v2565_v25 = vpop.eup %2564 }
 0x77c   :  { %v2567_v29 = vpop.eup %2566  ;;  %v1627_v35 = vadd.f32 1.0, %v2565_v25 }
 0x77d   :  { %v1633_v36 = vadd.f32 1.0, %v2567_v29  ;;  %v2569_v37 = vpop.eup %2568 }
 0x77e   :  { %2572 = vrcp.f32 %v1627_v35  ;;  %v2571_v43 = vpop.eup %2570  ;;  %v1640_v6 = vadd.f32 1.0, %v2569_v37 }
 0x77f   :  { %2574 = vrcp.f32 %v1633_v36 }
 0x780   :  { %2576 = vrcp.f32 %v1640_v6 }
 0x788   :  { %v2573_v52 = vpop.eup %2572 }
 0x789   :  { %v2575_v54 = vpop.eup %2574  ;;  %v1647_v59 = vmul.f32 %v2573_v52, %v2571_v43 }
 0x78a   :  { %v1646_v7 = vmul.f32 %v2575_v54, %v1644_v53  ;;  %v2577_v14 = vpop.eup %2576 }
 0x78c   :  { %v1648_v8 = vadd.f32 %v1647_v59, %v1646_v7 }
 0x78e   :  { %2578 = vtanh.f32 %v1648_v8  ;;  %v1833_v22 = vrot.slane %v1648_v8, 6 }
 0x798   :  { %v2579_v18 = vpop.eup %2578 }
 0x799   :  { %v1650_v19 = vmul.f32 %v2579_v18, %v2577_v14 }
 0x79b   :  { %1651 = vst [vmem:[#allocation8 + $0x8] sm:$0x30] %v1650_v19  ;;  %v1653_v9 = vrot.slane %v1650_v19, 4 }
 0x79d   :  { %1720 = vmatmul.mubr.f32.vlgmr.msra.gmra.mrb[18].mxu0 %v1653_v9  ;;  %1791 = vmatmul.mubr.f32.vlgmr.msra.gmra.mrb[18].mxu1 %v1653_v9 }
 0x870   :  { %v1721_v26 = vpop.f32.mrb[18].mxu0  ;;  %v1792_v32 = vpop.f32.mrb[18].mxu1 }
 0x871   :  { %v1801_v33 = vrot.slane %v1721_v26, 2  ;;  %v1723_v34 = vpop.f32.mrb[19].mxu0  ;;  %v1794_v27 = vpop.f32.mrb[19].mxu1  ;;  %v1803_v1 = vrot.slane %v1792_v32, 2 }
 0x872   :  { %v1802_v40 = vrot.slane %v1723_v34, 2  ;;  %v1804_v42 = vrot.slane %v1794_v27, 2 }
 0x873   :  { %v1809_v44 = vadd.f32 %v1801_v33, %v2912_v46  ;;  %v1811_v48 = vadd.f32 %v1803_v1, %v2916_v57 }
 0x874   :  { %v1810_v47 = vadd.f32 %v1802_v40, %v2914_v56  ;;  %v1812_v45 = vadd.f32 %v1804_v42, %v2918_v60 }
 0x875   :  { %v1880_v38 = vmul.f32 -1.442695, %v1809_v44 }
 0x876   :  { %v1881_v39 = vmul.f32 -1.442695, %v1810_v47  ;;  %v1882_v2 = vmul.f32 -1.442695, %v1812_v45 }
 0x877   :  { %2580 = vpow2.f32 %v1880_v38 }
 0x878   :  { %2582 = vpow2.f32 %v1881_v39 }
 0x879   :  { %2584 = vpow2.f32 %v1882_v2 }
 0x87a   :  { %2586 = vtanh.f32 %v1811_v48 }
 0x881   :  { %v2581_v58 = vpop.eup %2580 }
 0x882   :  { %v2583_v3 = vpop.eup %2582  ;;  %v1816_v31 = vadd.f32 1.0, %v2581_v58 }
 0x883   :  { %v1822_v28 = vadd.f32 1.0, %v2583_v3  ;;  %v2585_v46 = vpop.eup %2584 }
 0x884   :  { %2588 = vrcp.f32 %v1816_v31  ;;  %v2587_v56 = vpop.eup %2586  ;;  %v1829_v30 = vadd.f32 1.0, %v2585_v46 }
 0x885   :  { %2590 = vrcp.f32 %v1822_v28 }
 0x886   :  { %2592 = vrcp.f32 %v1829_v30 }
 0x88e   :  { %v2589_v41 = vpop.eup %2588 }
 0x88f   :  { %v2591_v11 = vpop.eup %2590  ;;  %v1836_v16 = vmul.f32 %v2589_v41, %v2587_v56 }
 0x890   :  { %v1835_v60 = vmul.f32 %v2591_v11, %v1833_v22  ;;  %v2593_v57 = vpop.eup %2592 }
 0x892   :  { %v1837_v5 = vadd.f32 %v1836_v16, %v1835_v60 }
 0x894   :  { %2594 = vtanh.f32 %v1837_v5 }
 0x89e   :  { %v2595_v20 = vpop.eup %2594 }
 0x89f   :  { %v1839_v21 = vmul.f32 %v2595_v20, %v2593_v57 }
 0x8a1   :  { %1840 = vst [vmem:[#allocation8 + $0x8] sm:$0xc0] %v1839_v21 }
 0x8a2   :  { %2673 = shalt.err (!%p2670_p0)
}
 0x8a3   :  { %s2674_s6 = scalar_lea.hbm %s3205_s4, 256 }
 0x8a4   :  { %p2675_p1 = scmp.ne.s32.totalorder %s3205_s4, %s2674_s6  ;;  %p2678_p2 = scmp.lt.u32.totalorder %s2674_s6, %s3205_s4 }
 0x8a6   :  { %p2680_p3 = pnand %p2678_p2, %p2675_p1 }
 0x8a8   :  { %2683 = shalt.err (!%p2680_p3)
}
 0x8a9   :  { %1852 = dma.vmem_to_hbm [thread:$0]  %s1847_s26, 256, %s3205_s4, [#allocation4], %s2694_s1, %s2694_s1, %s2695_s13  }
 0x8aa   :  { %2688 = dma.done.wait [#allocation4], 256  }
 0x8ab   :  { %2689 = vsyncadd [#allocation4], 4294967040 }
 0x8ac   :  { %1856 = vsyncpa [#allocation3], 1 }
 0x8ad   :  { %1857 = vsyncpa [#allocation6], 1 }
 0x8ae   :  { %1858 = vsyncpa [#allocation4], 1 }

</bundles_post_ra>
